<compile_context>
chip_gen: v7x
topology: tpu7x:2x2x1
jax: 0.10.0
libtpu: 0.0.40
codegen_flags: <defaults>
</compile_context>

<pallas_src>
import functools

import numpy as np

import jax
import jax.numpy as jnp
from jax import lax
from jax.experimental import pallas as pl
from jax.experimental.pallas import tpu as pltpu


# ------------------------------ Pallas kernel ------------------------------ #
def _decoder_kernel(x_ref, w1_ref, b1_ref,
                    r20_ref, r21_ref, r22_ref, b2_ref,
                    r30_ref, r31_ref, r32_ref, b3_ref,
                    o_ref, y1_ref, y2_ref, *, n, h1, h2):
    """Fully fused decoder forward.

    Intermediate activations are kept in VMEM scratch refs laid out as
    (spatial_row-major, batch-minor) x (W*C lanes), so every layer is a plain
    2-D matmul and the transposed-conv row interleave is done with static
    slab stores.
    """
    f32 = jnp.float32

    # ---- layer 1: ConvTranspose2d(10, 32, 7) on a 1x1 input ----------------
    # out[b, (i, j, co)] = sum_ci x[b, ci] * W1[ci, co, i, j] + b1[co]
    y1 = jnp.dot(x_ref[...], w1_ref[...], preferred_element_type=f32)
    y1 = jnp.maximum(y1 + b1_ref[...], 0.0)                 # (n, h1 * 7*32)

    lw1 = w1_ref.shape[1] // h1                              # lanes per row
    # zero-pad "row below the last" block, then scatter rows (i-major, b-minor)
    y1_ref[h1 * n:(h1 + 1) * n, :] = jnp.zeros((n, lw1), f32)
    for i in range(h1):
        y1_ref[i * n:(i + 1) * n, :] = y1[:, i * lw1:(i + 1) * lw1]

    # ---- layer 2: ConvTranspose2d(32, 16, 3, s=2, p=1, op=1) ---------------
    # even output rows (2m)   = row m   @ R_ky=1
    # odd  output rows (2m+1) = row m   @ R_ky=2  +  row m+1 @ R_ky=0
    y1_all = y1_ref[0:h1 * n, :]                # rows m
    y1_dn = y1_ref[n:(h1 + 1) * n, :]           # rows m+1 (zeros past the end)
    b2 = b2_ref[...]
    y2_even = jnp.maximum(
        jnp.dot(y1_all, r21_ref[...], preferred_element_type=f32) + b2, 0.0)
    y2_odd = jnp.maximum(
        jnp.dot(y1_all, r22_ref[...], preferred_element_type=f32)
        + jnp.dot(y1_dn, r20_ref[...], preferred_element_type=f32) + b2, 0.0)

    lw2 = b2.shape[1]
    y2_ref[h2 * n:(h2 + 1) * n, :] = jnp.zeros((n, lw2), f32)
    for i in range(h1):
        y2_ref[(2 * i) * n:(2 * i) * n + n, :] = y2_even[i * n:(i + 1) * n, :]
        y2_ref[(2 * i + 1) * n:(2 * i + 1) * n + n, :] = (
            y2_odd[i * n:(i + 1) * n, :])

    # ---- layer 3: ConvTranspose2d(16, 1, 3, s=2, p=1, op=1) + Sigmoid ------
    y2_all = y2_ref[0:h2 * n, :]
    y2_dn = y2_ref[n:(h2 + 1) * n, :]
    b3 = b3_ref[...]
    z_even = jnp.dot(y2_all, r31_ref[...], preferred_element_type=f32) + b3
    z_odd = (jnp.dot(y2_all, r32_ref[...], preferred_element_type=f32)
             + jnp.dot(y2_dn, r30_ref[...], preferred_element_type=f32) + b3)
    y3_even = 1.0 / (1.0 + jnp.exp(-z_even))                 # Sigmoid
    y3_odd = 1.0 / (1.0 + jnp.exp(-z_odd))

    for i in range(h2):
        o_ref[(2 * i) * n:(2 * i) * n + n, :] = y3_even[i * n:(i + 1) * n, :]
        o_ref[(2 * i + 1) * n:(2 * i + 1) * n + n, :] = (
            y3_odd[i * n:(i + 1) * n, :])


# --------------------------- parameter preparation ------------------------- #
def _row_operator(wt, ky, w_in):
    """Dense (W_in*Cin, 2*W_in*Cout) within-row operator for a transposed conv
    with k=3, stride=2, padding=1, output_padding=1, restricted to kernel row
    `ky`.  R[(j*Ci+ci), (ox*Co+co)] = W[ci, co, ky, ox - 2j + 1] (when valid).
    Built once in the wrapper (XLA glue), never inside the kernel."""
    ci, co, kh, kw = wt.shape
    ow = 2 * w_in
    p = np.zeros((w_in, kw, ow), np.float32)
    for j in range(w_in):
        for kx in range(kw):
            ox = 2 * j - 1 + kx
            if 0 <= ox < ow:
                p[j, kx, ox] = 1.0
    r = jnp.einsum("jko,cdk->jcod", jnp.asarray(p), wt[:, :, ky, :])
    return r.reshape(w_in * ci, ow * co)


def init_decoder_params(key):
    """Deterministic synthetic parameters with the module's shapes."""
    ks = jax.random.split(key, 6)

    def convt_init(kw_, kb_, cin, cout, kh, kw):
        bound = 1.0 / jnp.sqrt(cin * kh * kw)
        w = jax.random.uniform(kw_, (cin, cout, kh, kw), jnp.float32,
                               -bound, bound)
        b = jax.random.uniform(kb_, (cout,), jnp.float32, -bound, bound)
        return w, b

    w1, b1 = convt_init(ks[0], ks[1], 10, 32, 7, 7)
    w2, b2 = convt_init(ks[2], ks[3], 32, 16, 3, 3)
    w3, b3 = convt_init(ks[4], ks[5], 16, 1, 3, 3)
    return (w1, b1, w2, b2, w3, b3)


# --------------------------------- forward --------------------------------- #
@jax.jit
def decoder_forward(x_nchw, params):
    """Forward pass matching the PyTorch Decoder.
    Input (N, 10, 1, 1) -> output (N, 1, 28, 28)."""
    w1, b1, w2, b2, w3, b3 = params
    assert x_nchw.shape[1:] == (10, 1, 1), x_nchw.shape
    n = x_nchw.shape[0]
    h1, h2, h3 = 7, 14, 28
    cin1, c1, c2, c3 = 10, 32, 16, 1

    x2 = x_nchw.reshape(n, cin1)

    # one-off weight re-layout (outside the kernel)
    w1flat = jnp.transpose(w1, (0, 2, 3, 1)).reshape(cin1, h1 * h1 * c1)
    b1flat = jnp.tile(b1, h1 * h1).reshape(1, h1 * h1 * c1)
    r2 = [_row_operator(w2, ky, h1) for ky in range(3)]      # (224, 224) each
    b2row = jnp.tile(b2, h2).reshape(1, h2 * c2)
    r3 = [_row_operator(w3, ky, h2) for ky in range(3)]      # (224, 28) each
    b3row = jnp.tile(b3, h3).reshape(1, h3 * c3)

    operands = (x2, w1flat, b1flat, r2[0], r2[1], r2[2], b2row,
                r3[0], r3[1], r3[2], b3row)

    flops = 2 * n * (cin1 * h1 * h1 * c1
                     + 3 * h1 * (h1 * c1) * (h2 * c2)
                     + 3 * h2 * (h2 * c2) * (h3 * c3))
    bytes_accessed = (sum(int(np.prod(a.shape)) for a in operands)
                      + n * h3 * h3) * 4

    out = pl.pallas_call(
        functools.partial(_decoder_kernel, n=n, h1=h1, h2=h2),
        out_shape=jax.ShapeDtypeStruct((h3 * n, h3 * c3), jnp.float32),
        grid=(1,),
        in_specs=[pl.BlockSpec(a.shape, lambda i: (0, 0)) for a in operands],
        out_specs=pl.BlockSpec((h3 * n, h3 * c3), lambda i: (0, 0)),
        scratch_shapes=[
            pltpu.VMEM(((h1 + 1) * n, h1 * c1), jnp.float32),
            pltpu.VMEM(((h2 + 1) * n, h2 * c2), jnp.float32),
        ],
        compiler_params=pltpu.CompilerParams(
            dimension_semantics=("arbitrary",)),
        cost_estimate=pl.CostEstimate(
            flops=flops, transcendentals=n * h3 * h3,
            bytes_accessed=bytes_accessed),
    )(*operands)

    # rows are ordered (output_row-major, batch-minor); restore NCHW outside.
    return out.reshape(h3, n, h3).transpose(1, 0, 2)[:, None, :, :]


# -------------------------------- reference -------------------------------- #
def _decoder_reference(x, params):
    w1, b1, w2, b2, w3, b3 = params

    def convT(x, wt, b, s, p, op):
        ci, co, kh, kw = wt.shape
        wc = jnp.transpose(wt[:, :, ::-1, ::-1], (1, 0, 2, 3))  # (co,ci,kh,kw)
        y = lax.conv_general_dilated(
            x, wc, window_strides=(1, 1),
            padding=[(kh - 1 - p, kh - 1 - p + op),
                     (kw - 1 - p, kw - 1 - p + op)],
            lhs_dilation=(s, s),
            dimension_numbers=("NCHW", "OIHW", "NCHW"),
            precision=lax.Precision.HIGHEST)
        return y + b.reshape(1, -1, 1, 1)

    y = jax.nn.relu(convT(x, w1, b1, 1, 0, 0))
    y = jax.nn.relu(convT(y, w2, b2, 2, 1, 1))
    return jax.nn.sigmoid(convT(y, w3, b3, 2, 1, 1))


if __name__ == "__main__":
    key = jax.random.PRNGKey(0)
    k_x, k_p = jax.random.split(key)

    # latent input implied by the module: batch=2, 10 channels, 1x1 spatial
    x = jax.random.normal(k_x, (2, 10, 1, 1), jnp.float32)
    params = init_decoder_params(k_p)

    out = jax.block_until_ready(decoder_forward(x, params))
    assert out.shape == (2, 1, 28, 28), out.shape

    ref = jax.block_until_ready(_decoder_reference(x, params))
    assert jnp.allclose(out, ref, atol=1e-3, rtol=1e-3), (
        float(jnp.max(jnp.abs(out - ref))))

    print("KERNEL_OK")
</pallas_src>

<mosaic_0001>
module attributes {stable_mosaic.version = 11 : i64} {
  func.func @_decoder_kernel(%arg0: i32, %arg1: memref<2x10xf32, #tpu.memory_space<vmem>>, %arg2: memref<10x1568xf32, #tpu.memory_space<vmem>>, %arg3: memref<1x1568xf32, #tpu.memory_space<vmem>>, %arg4: memref<224x224xf32, #tpu.memory_space<vmem>>, %arg5: memref<224x224xf32, #tpu.memory_space<vmem>>, %arg6: memref<224x224xf32, #tpu.memory_space<vmem>>, %arg7: memref<1x224xf32, #tpu.memory_space<vmem>>, %arg8: memref<224x28xf32, #tpu.memory_space<vmem>>, %arg9: memref<224x28xf32, #tpu.memory_space<vmem>>, %arg10: memref<224x28xf32, #tpu.memory_space<vmem>>, %arg11: memref<1x28xf32, #tpu.memory_space<vmem>>, %arg12: memref<56x28xf32, #tpu.memory_space<vmem>>, %arg13: memref<16x224xf32, #tpu.memory_space<vmem>>, %arg14: memref<30x224xf32, #tpu.memory_space<vmem>>) attributes {dimension_semantics = [#tpu.dimension_semantics<arbitrary>], iteration_bounds = array<i64: 1>, scalar_prefetch = 0 : i64, scratch_operands = 2 : i64, tpu.core_type = #tpu.core_type<tc>, window_params = [{pipeline_mode = #tpu.pipeline_mode<synchronous>, transform_indices = @transform_0, window_bounds = array<i64: 2, 10>}, {pipeline_mode = #tpu.pipeline_mode<synchronous>, transform_indices = @transform_1, window_bounds = array<i64: 10, 1568>}, {pipeline_mode = #tpu.pipeline_mode<synchronous>, transform_indices = @transform_2, window_bounds = array<i64: 1, 1568>}, {pipeline_mode = #tpu.pipeline_mode<synchronous>, transform_indices = @transform_3, window_bounds = array<i64: 224, 224>}, {pipeline_mode = #tpu.pipeline_mode<synchronous>, transform_indices = @transform_4, window_bounds = array<i64: 224, 224>}, {pipeline_mode = #tpu.pipeline_mode<synchronous>, transform_indices = @transform_5, window_bounds = array<i64: 224, 224>}, {pipeline_mode = #tpu.pipeline_mode<synchronous>, transform_indices = @transform_6, window_bounds = array<i64: 1, 224>}, {pipeline_mode = #tpu.pipeline_mode<synchronous>, transform_indices = @transform_7, window_bounds = array<i64: 224, 28>}, {pipeline_mode = #tpu.pipeline_mode<synchronous>, transform_indices = @transform_8, window_bounds = array<i64: 224, 28>}, {pipeline_mode = #tpu.pipeline_mode<synchronous>, transform_indices = @transform_9, window_bounds = array<i64: 224, 28>}, {pipeline_mode = #tpu.pipeline_mode<synchronous>, transform_indices = @transform_10, window_bounds = array<i64: 1, 28>}, {pipeline_mode = #tpu.pipeline_mode<synchronous>, transform_indices = @transform_11, window_bounds = array<i64: 56, 28>}]} {
    %c0 = arith.constant 0 : index
    %c0_0 = arith.constant 0 : index
    %0 = vector.load %arg1[%c0, %c0_0] : memref<2x10xf32, #tpu.memory_space<vmem>>, vector<2x10xf32>
    %c0_1 = arith.constant 0 : index
    %c0_2 = arith.constant 0 : index
    %1 = vector.load %arg2[%c0_1, %c0_2] : memref<10x1568xf32, #tpu.memory_space<vmem>>, vector<10x1568xf32>
    %cst = arith.constant dense<0.000000e+00> : vector<2x1568xf32>
    %2 = tpu.matmul %0, %1, %cst {dimension_numbers = #tpu.dot_dimension_numbers<[1], [0], [0], [1], [0, 0, 1, 1], [], []>} : vector<2x10xf32>, vector<10x1568xf32>, vector<2x1568xf32> -> vector<2x1568xf32>
    %c0_3 = arith.constant 0 : index
    %c0_4 = arith.constant 0 : index
    %3 = vector.load %arg3[%c0_3, %c0_4] : memref<1x1568xf32, #tpu.memory_space<vmem>>, vector<1x1568xf32>
    %4 = vector.broadcast %3 : vector<1x1568xf32> to vector<2x1568xf32>
    %5 = arith.addf %2, %4 : vector<2x1568xf32>
    %cst_5 = arith.constant 0.000000e+00 : f32
    %6 = vector.broadcast %cst_5 : f32 to vector<2x1568xf32>
    %7 = arith.maximumf %5, %6 : vector<2x1568xf32>
    %cst_6 = arith.constant 0.000000e+00 : f32
    %8 = vector.broadcast %cst_6 : f32 to vector<2x224xf32>
    %c14 = arith.constant 14 : index
    %c0_7 = arith.constant 0 : index
    %9 = vector.load %arg13[%c14, %c0_7] : memref<16x224xf32, #tpu.memory_space<vmem>>, vector<2x224xf32>
    tpu.vector_store %arg13[%c14, %c0_7], %8 {strides = array<i32>} : memref<16x224xf32, #tpu.memory_space<vmem>>, vector<2x224xf32>,
    %10 = vector.extract_strided_slice %7 {offsets = [0, 0], sizes = [2, 224], strides = [1, 1]} : vector<2x1568xf32> to vector<2x224xf32>
    %c0_8 = arith.constant 0 : index
    %c0_9 = arith.constant 0 : index
    %11 = vector.load %arg13[%c0_8, %c0_9] : memref<16x224xf32, #tpu.memory_space<vmem>>, vector<2x224xf32>
    tpu.vector_store %arg13[%c0_8, %c0_9], %10 {strides = array<i32>} : memref<16x224xf32, #tpu.memory_space<vmem>>, vector<2x224xf32>,
    %12 = vector.extract_strided_slice %7 {offsets = [0, 224], sizes = [2, 224], strides = [1, 1]} : vector<2x1568xf32> to vector<2x224xf32>
    %c2 = arith.constant 2 : index
    %c0_10 = arith.constant 0 : index
    %13 = vector.load %arg13[%c2, %c0_10] : memref<16x224xf32, #tpu.memory_space<vmem>>, vector<2x224xf32>
    tpu.vector_store %arg13[%c2, %c0_10], %12 {strides = array<i32>} : memref<16x224xf32, #tpu.memory_space<vmem>>, vector<2x224xf32>,
    %14 = vector.extract_strided_slice %7 {offsets = [0, 448], sizes = [2, 224], strides = [1, 1]} : vector<2x1568xf32> to vector<2x224xf32>
    %c4 = arith.constant 4 : index
    %c0_11 = arith.constant 0 : index
    %15 = vector.load %arg13[%c4, %c0_11] : memref<16x224xf32, #tpu.memory_space<vmem>>, vector<2x224xf32>
    tpu.vector_store %arg13[%c4, %c0_11], %14 {strides = array<i32>} : memref<16x224xf32, #tpu.memory_space<vmem>>, vector<2x224xf32>,
    %16 = vector.extract_strided_slice %7 {offsets = [0, 672], sizes = [2, 224], strides = [1, 1]} : vector<2x1568xf32> to vector<2x224xf32>
    %c6 = arith.constant 6 : index
    %c0_12 = arith.constant 0 : index
    %17 = vector.load %arg13[%c6, %c0_12] : memref<16x224xf32, #tpu.memory_space<vmem>>, vector<2x224xf32>
    tpu.vector_store %arg13[%c6, %c0_12], %16 {strides = array<i32>} : memref<16x224xf32, #tpu.memory_space<vmem>>, vector<2x224xf32>,
    %18 = vector.extract_strided_slice %7 {offsets = [0, 896], sizes = [2, 224], strides = [1, 1]} : vector<2x1568xf32> to vector<2x224xf32>
    %c8 = arith.constant 8 : index
    %c0_13 = arith.constant 0 : index
    %19 = vector.load %arg13[%c8, %c0_13] : memref<16x224xf32, #tpu.memory_space<vmem>>, vector<2x224xf32>
    tpu.vector_store %arg13[%c8, %c0_13], %18 {strides = array<i32>} : memref<16x224xf32, #tpu.memory_space<vmem>>, vector<2x224xf32>,
    %20 = vector.extract_strided_slice %7 {offsets = [0, 1120], sizes = [2, 224], strides = [1, 1]} : vector<2x1568xf32> to vector<2x224xf32>
    %c10 = arith.constant 10 : index
    %c0_14 = arith.constant 0 : index
    %21 = vector.load %arg13[%c10, %c0_14] : memref<16x224xf32, #tpu.memory_space<vmem>>, vector<2x224xf32>
    tpu.vector_store %arg13[%c10, %c0_14], %20 {strides = array<i32>} : memref<16x224xf32, #tpu.memory_space<vmem>>, vector<2x224xf32>,
    %22 = vector.extract_strided_slice %7 {offsets = [0, 1344], sizes = [2, 224], strides = [1, 1]} : vector<2x1568xf32> to vector<2x224xf32>
    %c12 = arith.constant 12 : index
    %c0_15 = arith.constant 0 : index
    %23 = vector.load %arg13[%c12, %c0_15] : memref<16x224xf32, #tpu.memory_space<vmem>>, vector<2x224xf32>
    tpu.vector_store %arg13[%c12, %c0_15], %22 {strides = array<i32>} : memref<16x224xf32, #tpu.memory_space<vmem>>, vector<2x224xf32>,
    %c0_16 = arith.constant 0 : index
    %c0_17 = arith.constant 0 : index
    %24 = vector.load %arg13[%c0_16, %c0_17] : memref<16x224xf32, #tpu.memory_space<vmem>>, vector<14x224xf32>
    %c2_18 = arith.constant 2 : index
    %c0_19 = arith.constant 0 : index
    %25 = vector.load %arg13[%c2_18, %c0_19] : memref<16x224xf32, #tpu.memory_space<vmem>>, vector<14x224xf32>
    %c0_20 = arith.constant 0 : index
    %c0_21 = arith.constant 0 : index
    %26 = vector.load %arg7[%c0_20, %c0_21] : memref<1x224xf32, #tpu.memory_space<vmem>>, vector<1x224xf32>
    %c0_22 = arith.constant 0 : index
    %c0_23 = arith.constant 0 : index
    %27 = vector.load %arg5[%c0_22, %c0_23] : memref<224x224xf32, #tpu.memory_space<vmem>>, vector<224x224xf32>
    %cst_24 = arith.constant dense<0.000000e+00> : vector<14x224xf32>
    %28 = tpu.matmul %24, %27, %cst_24 {dimension_numbers = #tpu.dot_dimension_numbers<[1], [0], [0], [1], [0, 0, 1, 1], [], []>} : vector<14x224xf32>, vector<224x224xf32>, vector<14x224xf32> -> vector<14x224xf32>
    %29 = vector.broadcast %26 : vector<1x224xf32> to vector<14x224xf32>
    %30 = arith.addf %28, %29 : vector<14x224xf32>
    %cst_25 = arith.constant 0.000000e+00 : f32
    %31 = vector.broadcast %cst_25 : f32 to vector<14x224xf32>
    %32 = arith.maximumf %30, %31 : vector<14x224xf32>
    %c0_26 = arith.constant 0 : index
    %c0_27 = arith.constant 0 : index
    %33 = vector.load %arg6[%c0_26, %c0_27] : memref<224x224xf32, #tpu.memory_space<vmem>>, vector<224x224xf32>
    %cst_28 = arith.constant dense<0.000000e+00> : vector<14x224xf32>
    %34 = tpu.matmul %24, %33, %cst_28 {dimension_numbers = #tpu.dot_dimension_numbers<[1], [0], [0], [1], [0, 0, 1, 1], [], []>} : vector<14x224xf32>, vector<224x224xf32>, vector<14x224xf32> -> vector<14x224xf32>
    %c0_29 = arith.constant 0 : index
    %c0_30 = arith.constant 0 : index
    %35 = vector.load %arg4[%c0_29, %c0_30] : memref<224x224xf32, #tpu.memory_space<vmem>>, vector<224x224xf32>
    %cst_31 = arith.constant dense<0.000000e+00> : vector<14x224xf32>
    %36 = tpu.matmul %25, %35, %cst_31 {dimension_numbers = #tpu.dot_dimension_numbers<[1], [0], [0], [1], [0, 0, 1, 1], [], []>} : vector<14x224xf32>, vector<224x224xf32>, vector<14x224xf32> -> vector<14x224xf32>
    %37 = arith.addf %34, %36 : vector<14x224xf32>
    %38 = vector.broadcast %26 : vector<1x224xf32> to vector<14x224xf32>
    %39 = arith.addf %37, %38 : vector<14x224xf32>
    %cst_32 = arith.constant 0.000000e+00 : f32
    %40 = vector.broadcast %cst_32 : f32 to vector<14x224xf32>
    %41 = arith.maximumf %39, %40 : vector<14x224xf32>
    %cst_33 = arith.constant 0.000000e+00 : f32
    %42 = vector.broadcast %cst_33 : f32 to vector<2x224xf32>
    %c28 = arith.constant 28 : index
    %c0_34 = arith.constant 0 : index
    %43 = vector.load %arg14[%c28, %c0_34] : memref<30x224xf32, #tpu.memory_space<vmem>>, vector<2x224xf32>
    tpu.vector_store %arg14[%c28, %c0_34], %42 {strides = array<i32>} : memref<30x224xf32, #tpu.memory_space<vmem>>, vector<2x224xf32>,
    %44 = vector.extract_strided_slice %32 {offsets = [0, 0], sizes = [2, 224], strides = [1, 1]} : vector<14x224xf32> to vector<2x224xf32>
    %c0_35 = arith.constant 0 : index
    %c0_36 = arith.constant 0 : index
    %45 = vector.load %arg14[%c0_35, %c0_36] : memref<30x224xf32, #tpu.memory_space<vmem>>, vector<2x224xf32>
    tpu.vector_store %arg14[%c0_35, %c0_36], %44 {strides = array<i32>} : memref<30x224xf32, #tpu.memory_space<vmem>>, vector<2x224xf32>,
    %46 = vector.extract_strided_slice %41 {offsets = [0, 0], sizes = [2, 224], strides = [1, 1]} : vector<14x224xf32> to vector<2x224xf32>
    %c2_37 = arith.constant 2 : index
    %c0_38 = arith.constant 0 : index
    %47 = vector.load %arg14[%c2_37, %c0_38] : memref<30x224xf32, #tpu.memory_space<vmem>>, vector<2x224xf32>
    tpu.vector_store %arg14[%c2_37, %c0_38], %46 {strides = array<i32>} : memref<30x224xf32, #tpu.memory_space<vmem>>, vector<2x224xf32>,
    %48 = vector.extract_strided_slice %32 {offsets = [2, 0], sizes = [2, 224], strides = [1, 1]} : vector<14x224xf32> to vector<2x224xf32>
    %c4_39 = arith.constant 4 : index
    %c0_40 = arith.constant 0 : index
    %49 = vector.load %arg14[%c4_39, %c0_40] : memref<30x224xf32, #tpu.memory_space<vmem>>, vector<2x224xf32>
    tpu.vector_store %arg14[%c4_39, %c0_40], %48 {strides = array<i32>} : memref<30x224xf32, #tpu.memory_space<vmem>>, vector<2x224xf32>,
    %50 = vector.extract_strided_slice %41 {offsets = [2, 0], sizes = [2, 224], strides = [1, 1]} : vector<14x224xf32> to vector<2x224xf32>
    %c6_41 = arith.constant 6 : index
    %c0_42 = arith.constant 0 : index
    %51 = vector.load %arg14[%c6_41, %c0_42] : memref<30x224xf32, #tpu.memory_space<vmem>>, vector<2x224xf32>
    tpu.vector_store %arg14[%c6_41, %c0_42], %50 {strides = array<i32>} : memref<30x224xf32, #tpu.memory_space<vmem>>, vector<2x224xf32>,
    %52 = vector.extract_strided_slice %32 {offsets = [4, 0], sizes = [2, 224], strides = [1, 1]} : vector<14x224xf32> to vector<2x224xf32>
    %c8_43 = arith.constant 8 : index
    %c0_44 = arith.constant 0 : index
    %53 = vector.load %arg14[%c8_43, %c0_44] : memref<30x224xf32, #tpu.memory_space<vmem>>, vector<2x224xf32>
    tpu.vector_store %arg14[%c8_43, %c0_44], %52 {strides = array<i32>} : memref<30x224xf32, #tpu.memory_space<vmem>>, vector<2x224xf32>,
    %54 = vector.extract_strided_slice %41 {offsets = [4, 0], sizes = [2, 224], strides = [1, 1]} : vector<14x224xf32> to vector<2x224xf32>
    %c10_45 = arith.constant 10 : index
    %c0_46 = arith.constant 0 : index
    %55 = vector.load %arg14[%c10_45, %c0_46] : memref<30x224xf32, #tpu.memory_space<vmem>>, vector<2x224xf32>
    tpu.vector_store %arg14[%c10_45, %c0_46], %54 {strides = array<i32>} : memref<30x224xf32, #tpu.memory_space<vmem>>, vector<2x224xf32>,
    %56 = vector.extract_strided_slice %32 {offsets = [6, 0], sizes = [2, 224], strides = [1, 1]} : vector<14x224xf32> to vector<2x224xf32>
    %c12_47 = arith.constant 12 : index
    %c0_48 = arith.constant 0 : index
    %57 = vector.load %arg14[%c12_47, %c0_48] : memref<30x224xf32, #tpu.memory_space<vmem>>, vector<2x224xf32>
    tpu.vector_store %arg14[%c12_47, %c0_48], %56 {strides = array<i32>} : memref<30x224xf32, #tpu.memory_space<vmem>>, vector<2x224xf32>,
    %58 = vector.extract_strided_slice %41 {offsets = [6, 0], sizes = [2, 224], strides = [1, 1]} : vector<14x224xf32> to vector<2x224xf32>
    %c14_49 = arith.constant 14 : index
    %c0_50 = arith.constant 0 : index
    %59 = vector.load %arg14[%c14_49, %c0_50] : memref<30x224xf32, #tpu.memory_space<vmem>>, vector<2x224xf32>
    tpu.vector_store %arg14[%c14_49, %c0_50], %58 {strides = array<i32>} : memref<30x224xf32, #tpu.memory_space<vmem>>, vector<2x224xf32>,
    %60 = vector.extract_strided_slice %32 {offsets = [8, 0], sizes = [2, 224], strides = [1, 1]} : vector<14x224xf32> to vector<2x224xf32>
    %c16 = arith.constant 16 : index
    %c0_51 = arith.constant 0 : index
    %61 = vector.load %arg14[%c16, %c0_51] : memref<30x224xf32, #tpu.memory_space<vmem>>, vector<2x224xf32>
    tpu.vector_store %arg14[%c16, %c0_51], %60 {strides = array<i32>} : memref<30x224xf32, #tpu.memory_space<vmem>>, vector<2x224xf32>,
    %62 = vector.extract_strided_slice %41 {offsets = [8, 0], sizes = [2, 224], strides = [1, 1]} : vector<14x224xf32> to vector<2x224xf32>
    %c18 = arith.constant 18 : index
    %c0_52 = arith.constant 0 : index
    %63 = vector.load %arg14[%c18, %c0_52] : memref<30x224xf32, #tpu.memory_space<vmem>>, vector<2x224xf32>
    tpu.vector_store %arg14[%c18, %c0_52], %62 {strides = array<i32>} : memref<30x224xf32, #tpu.memory_space<vmem>>, vector<2x224xf32>,
    %64 = vector.extract_strided_slice %32 {offsets = [10, 0], sizes = [2, 224], strides = [1, 1]} : vector<14x224xf32> to vector<2x224xf32>
    %c20 = arith.constant 20 : index
    %c0_53 = arith.constant 0 : index
    %65 = vector.load %arg14[%c20, %c0_53] : memref<30x224xf32, #tpu.memory_space<vmem>>, vector<2x224xf32>
    tpu.vector_store %arg14[%c20, %c0_53], %64 {strides = array<i32>} : memref<30x224xf32, #tpu.memory_space<vmem>>, vector<2x224xf32>,
    %66 = vector.extract_strided_slice %41 {offsets = [10, 0], sizes = [2, 224], strides = [1, 1]} : vector<14x224xf32> to vector<2x224xf32>
    %c22 = arith.constant 22 : index
    %c0_54 = arith.constant 0 : index
    %67 = vector.load %arg14[%c22, %c0_54] : memref<30x224xf32, #tpu.memory_space<vmem>>, vector<2x224xf32>
    tpu.vector_store %arg14[%c22, %c0_54], %66 {strides = array<i32>} : memref<30x224xf32, #tpu.memory_space<vmem>>, vector<2x224xf32>,
    %68 = vector.extract_strided_slice %32 {offsets = [12, 0], sizes = [2, 224], strides = [1, 1]} : vector<14x224xf32> to vector<2x224xf32>
    %c24 = arith.constant 24 : index
    %c0_55 = arith.constant 0 : index
    %69 = vector.load %arg14[%c24, %c0_55] : memref<30x224xf32, #tpu.memory_space<vmem>>, vector<2x224xf32>
    tpu.vector_store %arg14[%c24, %c0_55], %68 {strides = array<i32>} : memref<30x224xf32, #tpu.memory_space<vmem>>, vector<2x224xf32>,
    %70 = vector.extract_strided_slice %41 {offsets = [12, 0], sizes = [2, 224], strides = [1, 1]} : vector<14x224xf32> to vector<2x224xf32>
    %c26 = arith.constant 26 : index
    %c0_56 = arith.constant 0 : index
    %71 = vector.load %arg14[%c26, %c0_56] : memref<30x224xf32, #tpu.memory_space<vmem>>, vector<2x224xf32>
    tpu.vector_store %arg14[%c26, %c0_56], %70 {strides = array<i32>} : memref<30x224xf32, #tpu.memory_space<vmem>>, vector<2x224xf32>,
    %c0_57 = arith.constant 0 : index
    %c0_58 = arith.constant 0 : index
    %72 = vector.load %arg14[%c0_57, %c0_58] : memref<30x224xf32, #tpu.memory_space<vmem>>, vector<28x224xf32>
    %c2_59 = arith.constant 2 : index
    %c0_60 = arith.constant 0 : index
    %73 = vector.load %arg14[%c2_59, %c0_60] : memref<30x224xf32, #tpu.memory_space<vmem>>, vector<28x224xf32>
    %c0_61 = arith.constant 0 : index
    %c0_62 = arith.constant 0 : index
    %74 = vector.load %arg11[%c0_61, %c0_62] : memref<1x28xf32, #tpu.memory_space<vmem>>, vector<1x28xf32>
    %c0_63 = arith.constant 0 : index
    %c0_64 = arith.constant 0 : index
    %75 = vector.load %arg9[%c0_63, %c0_64] : memref<224x28xf32, #tpu.memory_space<vmem>>, vector<224x28xf32>
    %cst_65 = arith.constant dense<0.000000e+00> : vector<28x28xf32>
    %76 = tpu.matmul %72, %75, %cst_65 {dimension_numbers = #tpu.dot_dimension_numbers<[1], [0], [0], [1], [0, 0, 1, 1], [], []>} : vector<28x224xf32>, vector<224x28xf32>, vector<28x28xf32> -> vector<28x28xf32>
    %77 = vector.broadcast %74 : vector<1x28xf32> to vector<28x28xf32>
    %78 = arith.addf %76, %77 : vector<28x28xf32>
    %c0_66 = arith.constant 0 : index
    %c0_67 = arith.constant 0 : index
    %79 = vector.load %arg10[%c0_66, %c0_67] : memref<224x28xf32, #tpu.memory_space<vmem>>, vector<224x28xf32>
    %cst_68 = arith.constant dense<0.000000e+00> : vector<28x28xf32>
    %80 = tpu.matmul %72, %79, %cst_68 {dimension_numbers = #tpu.dot_dimension_numbers<[1], [0], [0], [1], [0, 0, 1, 1], [], []>} : vector<28x224xf32>, vector<224x28xf32>, vector<28x28xf32> -> vector<28x28xf32>
    %c0_69 = arith.constant 0 : index
    %c0_70 = arith.constant 0 : index
    %81 = vector.load %arg8[%c0_69, %c0_70] : memref<224x28xf32, #tpu.memory_space<vmem>>, vector<224x28xf32>
    %cst_71 = arith.constant dense<0.000000e+00> : vector<28x28xf32>
    %82 = tpu.matmul %73, %81, %cst_71 {dimension_numbers = #tpu.dot_dimension_numbers<[1], [0], [0], [1], [0, 0, 1, 1], [], []>} : vector<28x224xf32>, vector<224x28xf32>, vector<28x28xf32> -> vector<28x28xf32>
    %83 = arith.addf %80, %82 : vector<28x28xf32>
    %84 = vector.broadcast %74 : vector<1x28xf32> to vector<28x28xf32>
    %85 = arith.addf %83, %84 : vector<28x28xf32>
    %cst_72 = arith.constant 0.000000e+00 : f32
    %86 = vector.broadcast %cst_72 : f32 to vector<28x28xf32>
    %87 = arith.subf %86, %78 : vector<28x28xf32>
    %88 = math.exp %87 : vector<28x28xf32>
    %cst_73 = arith.constant 1.000000e+00 : f32
    %89 = vector.broadcast %cst_73 : f32 to vector<28x28xf32>
    %90 = arith.addf %89, %88 : vector<28x28xf32>
    %cst_74 = arith.constant 1.000000e+00 : f32
    %91 = vector.broadcast %cst_74 : f32 to vector<28x28xf32>
    %92 = arith.divf %91, %90 : vector<28x28xf32>
    %cst_75 = arith.constant 0.000000e+00 : f32
    %93 = vector.broadcast %cst_75 : f32 to vector<28x28xf32>
    %94 = arith.subf %93, %85 : vector<28x28xf32>
    %95 = math.exp %94 : vector<28x28xf32>
    %cst_76 = arith.constant 1.000000e+00 : f32
    %96 = vector.broadcast %cst_76 : f32 to vector<28x28xf32>
    %97 = arith.addf %96, %95 : vector<28x28xf32>
    %cst_77 = arith.constant 1.000000e+00 : f32
    %98 = vector.broadcast %cst_77 : f32 to vector<28x28xf32>
    %99 = arith.divf %98, %97 : vector<28x28xf32>
    %100 = vector.extract_strided_slice %92 {offsets = [0, 0], sizes = [2, 28], strides = [1, 1]} : vector<28x28xf32> to vector<2x28xf32>
    %c0_78 = arith.constant 0 : index
    %c0_79 = arith.constant 0 : index
    %101 = vector.load %arg12[%c0_78, %c0_79] : memref<56x28xf32, #tpu.memory_space<vmem>>, vector<2x28xf32>
    tpu.vector_store %arg12[%c0_78, %c0_79], %100 {strides = array<i32>} : memref<56x28xf32, #tpu.memory_space<vmem>>, vector<2x28xf32>,
    %102 = vector.extract_strided_slice %99 {offsets = [0, 0], sizes = [2, 28], strides = [1, 1]} : vector<28x28xf32> to vector<2x28xf32>
    %c2_80 = arith.constant 2 : index
    %c0_81 = arith.constant 0 : index
    %103 = vector.load %arg12[%c2_80, %c0_81] : memref<56x28xf32, #tpu.memory_space<vmem>>, vector<2x28xf32>
    tpu.vector_store %arg12[%c2_80, %c0_81], %102 {strides = array<i32>} : memref<56x28xf32, #tpu.memory_space<vmem>>, vector<2x28xf32>,
    %104 = vector.extract_strided_slice %92 {offsets = [2, 0], sizes = [2, 28], strides = [1, 1]} : vector<28x28xf32> to vector<2x28xf32>
    %c4_82 = arith.constant 4 : index
    %c0_83 = arith.constant 0 : index
    %105 = vector.load %arg12[%c4_82, %c0_83] : memref<56x28xf32, #tpu.memory_space<vmem>>, vector<2x28xf32>
    tpu.vector_store %arg12[%c4_82, %c0_83], %104 {strides = array<i32>} : memref<56x28xf32, #tpu.memory_space<vmem>>, vector<2x28xf32>,
    %106 = vector.extract_strided_slice %99 {offsets = [2, 0], sizes = [2, 28], strides = [1, 1]} : vector<28x28xf32> to vector<2x28xf32>
    %c6_84 = arith.constant 6 : index
    %c0_85 = arith.constant 0 : index
    %107 = vector.load %arg12[%c6_84, %c0_85] : memref<56x28xf32, #tpu.memory_space<vmem>>, vector<2x28xf32>
    tpu.vector_store %arg12[%c6_84, %c0_85], %106 {strides = array<i32>} : memref<56x28xf32, #tpu.memory_space<vmem>>, vector<2x28xf32>,
    %108 = vector.extract_strided_slice %92 {offsets = [4, 0], sizes = [2, 28], strides = [1, 1]} : vector<28x28xf32> to vector<2x28xf32>
    %c8_86 = arith.constant 8 : index
    %c0_87 = arith.constant 0 : index
    %109 = vector.load %arg12[%c8_86, %c0_87] : memref<56x28xf32, #tpu.memory_space<vmem>>, vector<2x28xf32>
    tpu.vector_store %arg12[%c8_86, %c0_87], %108 {strides = array<i32>} : memref<56x28xf32, #tpu.memory_space<vmem>>, vector<2x28xf32>,
    %110 = vector.extract_strided_slice %99 {offsets = [4, 0], sizes = [2, 28], strides = [1, 1]} : vector<28x28xf32> to vector<2x28xf32>
    %c10_88 = arith.constant 10 : index
    %c0_89 = arith.constant 0 : index
    %111 = vector.load %arg12[%c10_88, %c0_89] : memref<56x28xf32, #tpu.memory_space<vmem>>, vector<2x28xf32>
    tpu.vector_store %arg12[%c10_88, %c0_89], %110 {strides = array<i32>} : memref<56x28xf32, #tpu.memory_space<vmem>>, vector<2x28xf32>,
    %112 = vector.extract_strided_slice %92 {offsets = [6, 0], sizes = [2, 28], strides = [1, 1]} : vector<28x28xf32> to vector<2x28xf32>
    %c12_90 = arith.constant 12 : index
    %c0_91 = arith.constant 0 : index
    %113 = vector.load %arg12[%c12_90, %c0_91] : memref<56x28xf32, #tpu.memory_space<vmem>>, vector<2x28xf32>
    tpu.vector_store %arg12[%c12_90, %c0_91], %112 {strides = array<i32>} : memref<56x28xf32, #tpu.memory_space<vmem>>, vector<2x28xf32>,
    %114 = vector.extract_strided_slice %99 {offsets = [6, 0], sizes = [2, 28], strides = [1, 1]} : vector<28x28xf32> to vector<2x28xf32>
    %c14_92 = arith.constant 14 : index
    %c0_93 = arith.constant 0 : index
    %115 = vector.load %arg12[%c14_92, %c0_93] : memref<56x28xf32, #tpu.memory_space<vmem>>, vector<2x28xf32>
    tpu.vector_store %arg12[%c14_92, %c0_93], %114 {strides = array<i32>} : memref<56x28xf32, #tpu.memory_space<vmem>>, vector<2x28xf32>,
    %116 = vector.extract_strided_slice %92 {offsets = [8, 0], sizes = [2, 28], strides = [1, 1]} : vector<28x28xf32> to vector<2x28xf32>
    %c16_94 = arith.constant 16 : index
    %c0_95 = arith.constant 0 : index
    %117 = vector.load %arg12[%c16_94, %c0_95] : memref<56x28xf32, #tpu.memory_space<vmem>>, vector<2x28xf32>
    tpu.vector_store %arg12[%c16_94, %c0_95], %116 {strides = array<i32>} : memref<56x28xf32, #tpu.memory_space<vmem>>, vector<2x28xf32>,
    %118 = vector.extract_strided_slice %99 {offsets = [8, 0], sizes = [2, 28], strides = [1, 1]} : vector<28x28xf32> to vector<2x28xf32>
    %c18_96 = arith.constant 18 : index
    %c0_97 = arith.constant 0 : index
    %119 = vector.load %arg12[%c18_96, %c0_97] : memref<56x28xf32, #tpu.memory_space<vmem>>, vector<2x28xf32>
    tpu.vector_store %arg12[%c18_96, %c0_97], %118 {strides = array<i32>} : memref<56x28xf32, #tpu.memory_space<vmem>>, vector<2x28xf32>,
    %120 = vector.extract_strided_slice %92 {offsets = [10, 0], sizes = [2, 28], strides = [1, 1]} : vector<28x28xf32> to vector<2x28xf32>
    %c20_98 = arith.constant 20 : index
    %c0_99 = arith.constant 0 : index
    %121 = vector.load %arg12[%c20_98, %c0_99] : memref<56x28xf32, #tpu.memory_space<vmem>>, vector<2x28xf32>
    tpu.vector_store %arg12[%c20_98, %c0_99], %120 {strides = array<i32>} : memref<56x28xf32, #tpu.memory_space<vmem>>, vector<2x28xf32>,
    %122 = vector.extract_strided_slice %99 {offsets = [10, 0], sizes = [2, 28], strides = [1, 1]} : vector<28x28xf32> to vector<2x28xf32>
    %c22_100 = arith.constant 22 : index
    %c0_101 = arith.constant 0 : index
    %123 = vector.load %arg12[%c22_100, %c0_101] : memref<56x28xf32, #tpu.memory_space<vmem>>, vector<2x28xf32>
    tpu.vector_store %arg12[%c22_100, %c0_101], %122 {strides = array<i32>} : memref<56x28xf32, #tpu.memory_space<vmem>>, vector<2x28xf32>,
    %124 = vector.extract_strided_slice %92 {offsets = [12, 0], sizes = [2, 28], strides = [1, 1]} : vector<28x28xf32> to vector<2x28xf32>
    %c24_102 = arith.constant 24 : index
    %c0_103 = arith.constant 0 : index
    %125 = vector.load %arg12[%c24_102, %c0_103] : memref<56x28xf32, #tpu.memory_space<vmem>>, vector<2x28xf32>
    tpu.vector_store %arg12[%c24_102, %c0_103], %124 {strides = array<i32>} : memref<56x28xf32, #tpu.memory_space<vmem>>, vector<2x28xf32>,
    %126 = vector.extract_strided_slice %99 {offsets = [12, 0], sizes = [2, 28], strides = [1, 1]} : vector<28x28xf32> to vector<2x28xf32>
    %c26_104 = arith.constant 26 : index
    %c0_105 = arith.constant 0 : index
    %127 = vector.load %arg12[%c26_104, %c0_105] : memref<56x28xf32, #tpu.memory_space<vmem>>, vector<2x28xf32>
    tpu.vector_store %arg12[%c26_104, %c0_105], %126 {strides = array<i32>} : memref<56x28xf32, #tpu.memory_space<vmem>>, vector<2x28xf32>,
    %128 = vector.extract_strided_slice %92 {offsets = [14, 0], sizes = [2, 28], strides = [1, 1]} : vector<28x28xf32> to vector<2x28xf32>
    %c28_106 = arith.constant 28 : index
    %c0_107 = arith.constant 0 : index
    %129 = vector.load %arg12[%c28_106, %c0_107] : memref<56x28xf32, #tpu.memory_space<vmem>>, vector<2x28xf32>
    tpu.vector_store %arg12[%c28_106, %c0_107], %128 {strides = array<i32>} : memref<56x28xf32, #tpu.memory_space<vmem>>, vector<2x28xf32>,
    %130 = vector.extract_strided_slice %99 {offsets = [14, 0], sizes = [2, 28], strides = [1, 1]} : vector<28x28xf32> to vector<2x28xf32>
    %c30 = arith.constant 30 : index
    %c0_108 = arith.constant 0 : index
    %131 = vector.load %arg12[%c30, %c0_108] : memref<56x28xf32, #tpu.memory_space<vmem>>, vector<2x28xf32>
    tpu.vector_store %arg12[%c30, %c0_108], %130 {strides = array<i32>} : memref<56x28xf32, #tpu.memory_space<vmem>>, vector<2x28xf32>,
    %132 = vector.extract_strided_slice %92 {offsets = [16, 0], sizes = [2, 28], strides = [1, 1]} : vector<28x28xf32> to vector<2x28xf32>
    %c32 = arith.constant 32 : index
    %c0_109 = arith.constant 0 : index
    %133 = vector.load %arg12[%c32, %c0_109] : memref<56x28xf32, #tpu.memory_space<vmem>>, vector<2x28xf32>
    tpu.vector_store %arg12[%c32, %c0_109], %132 {strides = array<i32>} : memref<56x28xf32, #tpu.memory_space<vmem>>, vector<2x28xf32>,
    %134 = vector.extract_strided_slice %99 {offsets = [16, 0], sizes = [2, 28], strides = [1, 1]} : vector<28x28xf32> to vector<2x28xf32>
    %c34 = arith.constant 34 : index
    %c0_110 = arith.constant 0 : index
    %135 = vector.load %arg12[%c34, %c0_110] : memref<56x28xf32, #tpu.memory_space<vmem>>, vector<2x28xf32>
    tpu.vector_store %arg12[%c34, %c0_110], %134 {strides = array<i32>} : memref<56x28xf32, #tpu.memory_space<vmem>>, vector<2x28xf32>,
    %136 = vector.extract_strided_slice %92 {offsets = [18, 0], sizes = [2, 28], strides = [1, 1]} : vector<28x28xf32> to vector<2x28xf32>
    %c36 = arith.constant 36 : index
    %c0_111 = arith.constant 0 : index
    %137 = vector.load %arg12[%c36, %c0_111] : memref<56x28xf32, #tpu.memory_space<vmem>>, vector<2x28xf32>
    tpu.vector_store %arg12[%c36, %c0_111], %136 {strides = array<i32>} : memref<56x28xf32, #tpu.memory_space<vmem>>, vector<2x28xf32>,
    %138 = vector.extract_strided_slice %99 {offsets = [18, 0], sizes = [2, 28], strides = [1, 1]} : vector<28x28xf32> to vector<2x28xf32>
    %c38 = arith.constant 38 : index
    %c0_112 = arith.constant 0 : index
    %139 = vector.load %arg12[%c38, %c0_112] : memref<56x28xf32, #tpu.memory_space<vmem>>, vector<2x28xf32>
    tpu.vector_store %arg12[%c38, %c0_112], %138 {strides = array<i32>} : memref<56x28xf32, #tpu.memory_space<vmem>>, vector<2x28xf32>,
    %140 = vector.extract_strided_slice %92 {offsets = [20, 0], sizes = [2, 28], strides = [1, 1]} : vector<28x28xf32> to vector<2x28xf32>
    %c40 = arith.constant 40 : index
    %c0_113 = arith.constant 0 : index
    %141 = vector.load %arg12[%c40, %c0_113] : memref<56x28xf32, #tpu.memory_space<vmem>>, vector<2x28xf32>
    tpu.vector_store %arg12[%c40, %c0_113], %140 {strides = array<i32>} : memref<56x28xf32, #tpu.memory_space<vmem>>, vector<2x28xf32>,
    %142 = vector.extract_strided_slice %99 {offsets = [20, 0], sizes = [2, 28], strides = [1, 1]} : vector<28x28xf32> to vector<2x28xf32>
    %c42 = arith.constant 42 : index
    %c0_114 = arith.constant 0 : index
    %143 = vector.load %arg12[%c42, %c0_114] : memref<56x28xf32, #tpu.memory_space<vmem>>, vector<2x28xf32>
    tpu.vector_store %arg12[%c42, %c0_114], %142 {strides = array<i32>} : memref<56x28xf32, #tpu.memory_space<vmem>>, vector<2x28xf32>,
    %144 = vector.extract_strided_slice %92 {offsets = [22, 0], sizes = [2, 28], strides = [1, 1]} : vector<28x28xf32> to vector<2x28xf32>
    %c44 = arith.constant 44 : index
    %c0_115 = arith.constant 0 : index
    %145 = vector.load %arg12[%c44, %c0_115] : memref<56x28xf32, #tpu.memory_space<vmem>>, vector<2x28xf32>
    tpu.vector_store %arg12[%c44, %c0_115], %144 {strides = array<i32>} : memref<56x28xf32, #tpu.memory_space<vmem>>, vector<2x28xf32>,
    %146 = vector.extract_strided_slice %99 {offsets = [22, 0], sizes = [2, 28], strides = [1, 1]} : vector<28x28xf32> to vector<2x28xf32>
    %c46 = arith.constant 46 : index
    %c0_116 = arith.constant 0 : index
    %147 = vector.load %arg12[%c46, %c0_116] : memref<56x28xf32, #tpu.memory_space<vmem>>, vector<2x28xf32>
    tpu.vector_store %arg12[%c46, %c0_116], %146 {strides = array<i32>} : memref<56x28xf32, #tpu.memory_space<vmem>>, vector<2x28xf32>,
    %148 = vector.extract_strided_slice %92 {offsets = [24, 0], sizes = [2, 28], strides = [1, 1]} : vector<28x28xf32> to vector<2x28xf32>
    %c48 = arith.constant 48 : index
    %c0_117 = arith.constant 0 : index
    %149 = vector.load %arg12[%c48, %c0_117] : memref<56x28xf32, #tpu.memory_space<vmem>>, vector<2x28xf32>
    tpu.vector_store %arg12[%c48, %c0_117], %148 {strides = array<i32>} : memref<56x28xf32, #tpu.memory_space<vmem>>, vector<2x28xf32>,
    %150 = vector.extract_strided_slice %99 {offsets = [24, 0], sizes = [2, 28], strides = [1, 1]} : vector<28x28xf32> to vector<2x28xf32>
    %c50 = arith.constant 50 : index
    %c0_118 = arith.constant 0 : index
    %151 = vector.load %arg12[%c50, %c0_118] : memref<56x28xf32, #tpu.memory_space<vmem>>, vector<2x28xf32>
    tpu.vector_store %arg12[%c50, %c0_118], %150 {strides = array<i32>} : memref<56x28xf32, #tpu.memory_space<vmem>>, vector<2x28xf32>,
    %152 = vector.extract_strided_slice %92 {offsets = [26, 0], sizes = [2, 28], strides = [1, 1]} : vector<28x28xf32> to vector<2x28xf32>
    %c52 = arith.constant 52 : index
    %c0_119 = arith.constant 0 : index
    %153 = vector.load %arg12[%c52, %c0_119] : memref<56x28xf32, #tpu.memory_space<vmem>>, vector<2x28xf32>
    tpu.vector_store %arg12[%c52, %c0_119], %152 {strides = array<i32>} : memref<56x28xf32, #tpu.memory_space<vmem>>, vector<2x28xf32>,
    %154 = vector.extract_strided_slice %99 {offsets = [26, 0], sizes = [2, 28], strides = [1, 1]} : vector<28x28xf32> to vector<2x28xf32>
    %c54 = arith.constant 54 : index
    %c0_120 = arith.constant 0 : index
    %155 = vector.load %arg12[%c54, %c0_120] : memref<56x28xf32, #tpu.memory_space<vmem>>, vector<2x28xf32>
    tpu.vector_store %arg12[%c54, %c0_120], %154 {strides = array<i32>} : memref<56x28xf32, #tpu.memory_space<vmem>>, vector<2x28xf32>,
    return
  }
  func.func @transform_0(%arg0: i32) -> (i32, i32) {
    %c0_i32 = arith.constant 0 : i32
    %c0_i32_0 = arith.constant 0 : i32
    %c0_i32_1 = arith.constant 0 : i32
    return %c0_i32, %c0_i32_0 : i32, i32
  }
  func.func @transform_1(%arg0: i32) -> (i32, i32) {
    %c0_i32 = arith.constant 0 : i32
    %c0_i32_0 = arith.constant 0 : i32
    %c0_i32_1 = arith.constant 0 : i32
    return %c0_i32, %c0_i32_0 : i32, i32
  }
  func.func @transform_2(%arg0: i32) -> (i32, i32) {
    %c0_i32 = arith.constant 0 : i32
    %c0_i32_0 = arith.constant 0 : i32
    %c0_i32_1 = arith.constant 0 : i32
    return %c0_i32, %c0_i32_0 : i32, i32
  }
  func.func @transform_3(%arg0: i32) -> (i32, i32) {
    %c0_i32 = arith.constant 0 : i32
    %c0_i32_0 = arith.constant 0 : i32
    %c0_i32_1 = arith.constant 0 : i32
    return %c0_i32, %c0_i32_0 : i32, i32
  }
  func.func @transform_4(%arg0: i32) -> (i32, i32) {
    %c0_i32 = arith.constant 0 : i32
    %c0_i32_0 = arith.constant 0 : i32
    %c0_i32_1 = arith.constant 0 : i32
    return %c0_i32, %c0_i32_0 : i32, i32
  }
  func.func @transform_5(%arg0: i32) -> (i32, i32) {
    %c0_i32 = arith.constant 0 : i32
    %c0_i32_0 = arith.constant 0 : i32
    %c0_i32_1 = arith.constant 0 : i32
    return %c0_i32, %c0_i32_0 : i32, i32
  }
  func.func @transform_6(%arg0: i32) -> (i32, i32) {
    %c0_i32 = arith.constant 0 : i32
    %c0_i32_0 = arith.constant 0 : i32
    %c0_i32_1 = arith.constant 0 : i32
    return %c0_i32, %c0_i32_0 : i32, i32
  }
  func.func @transform_7(%arg0: i32) -> (i32, i32) {
    %c0_i32 = arith.constant 0 : i32
    %c0_i32_0 = arith.constant 0 : i32
    %c0_i32_1 = arith.constant 0 : i32
    return %c0_i32, %c0_i32_0 : i32, i32
  }
  func.func @transform_8(%arg0: i32) -> (i32, i32) {
    %c0_i32 = arith.constant 0 : i32
    %c0_i32_0 = arith.constant 0 : i32
    %c0_i32_1 = arith.constant 0 : i32
    return %c0_i32, %c0_i32_0 : i32, i32
  }
  func.func @transform_9(%arg0: i32) -> (i32, i32) {
    %c0_i32 = arith.constant 0 : i32
    %c0_i32_0 = arith.constant 0 : i32
    %c0_i32_1 = arith.constant 0 : i32
    return %c0_i32, %c0_i32_0 : i32, i32
  }
  func.func @transform_10(%arg0: i32) -> (i32, i32) {
    %c0_i32 = arith.constant 0 : i32
    %c0_i32_0 = arith.constant 0 : i32
    %c0_i32_1 = arith.constant 0 : i32
    return %c0_i32, %c0_i32_0 : i32, i32
  }
  func.func @transform_11(%arg0: i32) -> (i32, i32) {
    %c0_i32 = arith.constant 0 : i32
    %c0_i32_0 = arith.constant 0 : i32
    %c0_i32_1 = arith.constant 0 : i32
    return %c0_i32, %c0_i32_0 : i32, i32
  }
}

</mosaic_0001>

<bundles_post_ra>
// kernel: tile.18
= control target key start
LH: loop header
LB: loop body
LE: loop exit
PB: predicated region body
PF: predicated region fallthrough
CT: control target
= control target key end

     0   :  { %s58_s0 = inlined_call_operand.vmem [shape: f32[32], index: 0, kind: input, shape index: {}]   ;;  %s59_s1 = inlined_call_operand.vmem [shape: f32[49,32], index: 1, kind: output, shape index: {}]  }
   0x1   :  { %v4_v0 = vld [vmem:[%s58_s0] ss:$0 sm:$0xff] }
   0x2   :  { %5 = vst [vmem:[%s59_s1] sm:$0xff] %v4_v0  ;;  %18 = vst [vmem:[%s59_s1 + $0x8] sm:$0xff] %v4_v0 }
   0x3   :  { %19 = vst [vmem:[%s59_s1 + $0x10] sm:$0xff] %v4_v0  ;;  %20 = vst [vmem:[%s59_s1 + $0x18] sm:$0xff] %v4_v0 }
   0x4   :  { %21 = vst [vmem:[%s59_s1 + $0x20] sm:$0xff] %v4_v0  ;;  %22 = vst [vmem:[%s59_s1 + $0x28] sm:$0xff] %v4_v0 }
   0x5   :  { %23 = vst [vmem:[%s59_s1 + $0x30] sm:$0xff] %v4_v0 }

// kernel: tile.19
= control target key start
LH: loop header
LB: loop body
LE: loop exit
PB: predicated region body
PF: predicated region fallthrough
CT: control target
= control target key end

     0   :  { %s165_s10 = smov 64   ;;  %s166_s11 = smov 96   ;;  %vm3_vm0 = vcmask 261120   ;;  %vm17_vm1 = vcmask 1048320   ;;  %vm31_vm2 = vcmask 785920   ;;  %vm45_vm3 = vcmask 523520   ;;  %s241_s0 = inlined_call_operand.vmem [shape: f32[49,32], index: 0, kind: input, shape index: {}]   ;;  %s242_s1 = inlined_call_operand.vmem [shape: f32[1,1568], index: 1, kind: output, shape index: {}]  }
   0x1   :  { %v146_v0 = vld [vmem:[%s241_s0 + $0x2] ss:$4 sm:$0xff]   ;;  %v144_v1 = vld [vmem:[%s241_s0 + $0x3] ss:$4 sm:$0xff]   ;;  %v2_v4 = vld [vmem:[%s241_s0] ss:$4 sm:$0xff]  }
   0x2   :  { %29 = vrot.lane.b32.xlu1 %v146_v0, %s165_s10  ;;  %15 = vrot.lane.b32.xlu0 %v144_v1, %s166_s11  ;;  %v147_v2 = vld [vmem:[%s241_s0 + $0x22] ss:$4 sm:$0xf]   ;;  %v145_v3 = vld [vmem:[%s241_s0 + $0x23] ss:$4 sm:$0xf]  }
   0x3   :  { %4 = vst.msk [vmem:[#allocation0] ss:$8 sm:$0xf] %vm3_vm0, %v2_v4   ;;  %5 = vst.msk [vmem:[#allocation0] ss:$8 sm:$0xf0] %vm3_vm0, %v2_v4  }
   0x4   :  { %v143_v5 = vld [vmem:[%s241_s0 + $0x20] ss:$4 sm:$0x1f]   ;;  %v149_v6 = vld [vmem:[%s241_s0 + $0x21] ss:$4 sm:$0xf]  }
   0x5   :  { %10 = vst.msk [vmem:[#allocation0 + $0x40] ss:$8 sm:$0xf] %vm3_vm0, %v143_v5   ;;  %12 = vst.msk [vmem:[#allocation0 + $0x5c] sm:$0x10] %vm3_vm0, %v143_v5  }
   0x6   :  { %36 = vrot.lane.b32.xlu1 %v147_v2, %s165_s10  ;;  %22 = vrot.lane.b32.xlu0 %v145_v3, %s166_s11  ;;  %v148_v7 = vld [vmem:[%s241_s0 + $0x1] ss:$4 sm:$0xff]   ;;  %s167_s0 = smov 32  }
   0xa   :  { %50 = vrot.lane.b32.xlu1 %v149_v6, %s167_s0  ;;  %43 = vrot.lane.b32.xlu0 %v148_v7, %s167_s0 }
   0xc   :  { %v127_v8 = vld [vmem:[#allocation0 + $0x60] sm:$0x1] }
   0xd   :  { %161 = vst [vmem:[%s242_s1 + $0xc] sm:$0x1] %v127_v8 }
  0x74   :  { %v30_v9 = vpop.permute.xlu1 %29   ;;  %v16_v10 = vpop.permute.xlu0 %15  }
  0x75   :  { %18 = vst.msk [vmem:[#allocation0] ss:$8 sm:$0xf] %vm17_vm1, %v16_v10   ;;  %19 = vst.msk [vmem:[#allocation0] ss:$8 sm:$0xf0] %vm17_vm1, %v16_v10  }
  0x76   :  { %32 = vst.msk [vmem:[#allocation0] ss:$8 sm:$0xf] %vm31_vm2, %v30_v9   ;;  %33 = vst.msk [vmem:[#allocation0] ss:$8 sm:$0xf0] %vm31_vm2, %v30_v9  }
  0x78   :  { %v37_v11 = vpop.permute.xlu1 %36   ;;  %v23_v12 = vpop.permute.xlu0 %22  }
  0x79   :  { %26 = vst.msk [vmem:[#allocation0 + $0x40] ss:$8 sm:$0xf] %vm17_vm1, %v23_v12  }
  0x7a   :  { %40 = vst.msk [vmem:[#allocation0 + $0x40] ss:$8 sm:$0xf] %vm31_vm2, %v37_v11  }
  0x7c   :  { %v51_v13 = vpop.permute.xlu1 %50   ;;  %v44_v14 = vpop.permute.xlu0 %43  }
  0x7d   :  { %54 = vst.msk [vmem:[#allocation0 + $0x40] ss:$8 sm:$0xf] %vm45_vm3, %v51_v13   ;;  %46 = vst.msk [vmem:[#allocation0] ss:$8 sm:$0xf] %vm45_vm3, %v44_v14  }
  0x7e   :  { %47 = vst.msk [vmem:[#allocation0] ss:$8 sm:$0xf0] %vm45_vm3, %v44_v14  }
  0x84   :  { %v103_v15 = vld [vmem:[#allocation0 + $0x40] sm:$0x1]  ;;  %v109_v16 = vld [vmem:[#allocation0 + $0x48] sm:$0x1]  ;;  %v115_v17 = vld [vmem:[#allocation0 + $0x50] sm:$0x1] }
  0x85   :  { %157 = vst [vmem:[%s242_s1 + $0x8] sm:$0x1] %v103_v15  ;;  %158 = vst [vmem:[%s242_s1 + $0x9] sm:$0x1] %v109_v16  ;;  %v121_v18 = vld [vmem:[#allocation0 + $0x58] sm:$0x1] }
  0x86   :  { %159 = vst [vmem:[%s242_s1 + $0xa] sm:$0x1] %v115_v17  ;;  %v58_v19 = vld [vmem:[#allocation0] sm:$0x1]  ;;  %v62_v20 = vld [vmem:[#allocation0 + $0x8] sm:$0x1] }
  0x87   :  { %160 = vst [vmem:[%s242_s1 + $0xb] sm:$0x1] %v121_v18  ;;  %60 = vst [vmem:[%s242_s1] sm:$0x1] %v58_v19  ;;  %v67_v21 = vld [vmem:[#allocation0 + $0x10] sm:$0x1] }
  0x88   :  { %150 = vst [vmem:[%s242_s1 + $0x1] sm:$0x1] %v62_v20  ;;  %v73_v22 = vld [vmem:[#allocation0 + $0x18] sm:$0x1]  ;;  %v79_v23 = vld [vmem:[#allocation0 + $0x20] sm:$0x1] }
  0x89   :  { %151 = vst [vmem:[%s242_s1 + $0x2] sm:$0x1] %v67_v21  ;;  %152 = vst [vmem:[%s242_s1 + $0x3] sm:$0x1] %v73_v22  ;;  %v85_v24 = vld [vmem:[#allocation0 + $0x28] sm:$0x1] }
  0x8a   :  { %153 = vst [vmem:[%s242_s1 + $0x4] sm:$0x1] %v79_v23  ;;  %v91_v25 = vld [vmem:[#allocation0 + $0x30] sm:$0x1]  ;;  %v97_v26 = vld [vmem:[#allocation0 + $0x38] sm:$0x1] }
  0x8b   :  { %154 = vst [vmem:[%s242_s1 + $0x5] sm:$0x1] %v85_v24  ;;  %155 = vst [vmem:[%s242_s1 + $0x6] sm:$0x1] %v91_v25 }
  0x8c   :  { %156 = vst [vmem:[%s242_s1 + $0x7] sm:$0x1] %v97_v26 }

// kernel: tile.23
= control target key start
LH: loop header
LB: loop body
LE: loop exit
PB: predicated region body
PF: predicated region fallthrough
CT: control target
= control target key end

     0   :  { %s28_s0 = inlined_call_operand.vmem [shape: f32[16], index: 0, kind: input, shape index: {}]   ;;  %s29_s1 = inlined_call_operand.vmem [shape: f32[14,16], index: 1, kind: output, shape index: {}]  }
   0x1   :  { %v4_v0 = vld [vmem:[%s28_s0] ss:$0 sm:$0xff] }
   0x2   :  { %5 = vst [vmem:[%s29_s1] sm:$0xff] %v4_v0  ;;  %8 = vst [vmem:[%s29_s1 + $0x8] sm:$0xff] %v4_v0 }

// kernel: tile.24
= control target key start
LH: loop header
LB: loop body
LE: loop exit
PB: predicated region body
PF: predicated region fallthrough
CT: control target
= control target key end

     0   :  { %s19_s8 = smov 3  ;;  %s79_s9 = smov 112   ;;  %vm4_vm0 = vcmask 130048   ;;  %vm10_vm1 = vcmask 1048448   ;;  %vm16_vm2 = vcmask 917248   ;;  %vm23_vm3 = vcmask 786048   ;;  %s126_s0 = inlined_call_operand.vmem [shape: f32[14,16], index: 0, kind: input, shape index: {}]   ;;  %s127_s1 = inlined_call_operand.vmem [shape: f32[1,224], index: 1, kind: output, shape index: {}]  }
   0x1   :  { %v64_v0 = vld [vmem:[%s126_s0 + $0x7] sm:$0x1]   ;;  %v66_v1 = vld [vmem:[%s126_s0 + $0x5] ss:$8 sm:%s19_s8]   ;;  %s80_s12 = smov 80   ;;  %s26_s15 = smov 3 }
   0x2   :  { %8 = vrot.lane.b32.xlu0 %v64_v0, %s79_s9  ;;  %21 = vrot.lane.b32.xlu1 %v66_v1, %s80_s12  ;;  %v65_v2 = vld [vmem:[%s126_s0 + $0x6] sm:$0x1]   ;;  %s33_s18 = smov 3  ;;  %s40_s19 = smov 3  ;;  %vm30_vm4 = vcmask 654848   ;;  %vm37_vm5 = vcmask 523648  }
   0x3   :  { %v67_v3 = vld [vmem:[%s126_s0 + $0x4] ss:$8 sm:%s26_s15]   ;;  %s81_s20 = smov 96   ;;  %s82_s21 = smov 64   ;;  %v68_v4 = vld [vmem:[%s126_s0 + $0x3] ss:$8 sm:%s33_s18]  }
   0x4   :  { %s2_s24 = smov 3  ;;  %v69_v5 = vld [vmem:[%s126_s0 + $0x2] ss:$8 sm:%s40_s19]   ;;  %s47_s27 = smov 3  ;;  %vm44_vm6 = vcmask 392448   ;;  %vm51_vm7 = vcmask 261248  }
   0x5   :  { %v3_v6 = vld [vmem:[%s126_s0] ss:$8 sm:%s2_s24]   ;;  %s83_s30 = smov 48   ;;  %s84_s2 = smov 32   ;;  %v70_v7 = vld [vmem:[%s126_s0 + $0x1] ss:$8 sm:%s47_s27]  }
   0x6   :  { %14 = vrot.lane.b32.xlu0 %v65_v2, %s81_s20  ;;  %28 = vrot.lane.b32.xlu1 %v67_v3, %s82_s21  ;;  %5 = vst.msk [vmem:[#allocation0] ss:$8 sm:$0x3] %vm4_vm0, %v3_v6   ;;  %s85_s0 = smov 16  }
   0xa   :  { %35 = vrot.lane.b32.xlu0 %v68_v4, %s83_s30  ;;  %42 = vrot.lane.b32.xlu1 %v69_v5, %s84_s2 }
   0xe   :  { %49 = vrot.lane.b32.xlu0 %v70_v7, %s85_s0 }
  0x74   :  { %v9_v8 = vpop.permute.xlu0 %8   ;;  %v22_v9 = vpop.permute.xlu1 %21  }
  0x75   :  { %11 = vst.msk [vmem:[#allocation0] sm:$0x1] %vm10_vm1, %v9_v8  }
  0x78   :  { %v15_v10 = vpop.permute.xlu0 %14   ;;  %v29_v11 = vpop.permute.xlu1 %28  }
  0x79   :  { %17 = vst.msk [vmem:[#allocation0] sm:$0x1] %vm16_vm2, %v15_v10  }
  0x7a   :  { %24 = vst.msk [vmem:[#allocation0] ss:$8 sm:$0x3] %vm23_vm3, %v22_v9  }
  0x7b   :  { %31 = vst.msk [vmem:[#allocation0] ss:$8 sm:$0x3] %vm30_vm4, %v29_v11  }
  0x7c   :  { %v36_v12 = vpop.permute.xlu0 %35   ;;  %v43_v13 = vpop.permute.xlu1 %42  }
  0x7d   :  { %38 = vst.msk [vmem:[#allocation0] ss:$8 sm:$0x3] %vm37_vm5, %v36_v12  }
  0x7e   :  { %45 = vst.msk [vmem:[#allocation0] ss:$8 sm:$0x3] %vm44_vm6, %v43_v13  }
  0x80   :  { %v50_v14 = vpop.permute.xlu0 %49  }
  0x81   :  { %52 = vst.msk [vmem:[#allocation0] ss:$8 sm:$0x3] %vm51_vm7, %v50_v14  }
  0x88   :  { %v56_v15 = vld [vmem:[#allocation0] sm:$0x1]  ;;  %v60_v16 = vld [vmem:[#allocation0 + $0x8] sm:$0x1] }
  0x89   :  { %58 = vst [vmem:[%s127_s1] sm:$0x1] %v56_v15  ;;  %71 = vst [vmem:[%s127_s1 + $0x1] sm:$0x1] %v60_v16 }

// kernel: decoder_forward.1
= control target key start
LH: loop header
LB: loop body
LE: loop exit
PB: predicated region body
PF: predicated region fallthrough
CT: control target
= control target key end

     0   :  { %vm138_vm0 = vcmask 1041408   ;;  %vm2234_vm1 = vmmov 1   ;;  %v2235_v3 = vmov 0.0   ;;  %vm134_vm3 = vcmask 80896   ;;  %s2238_s18 = smov 32   ;;  %s2240_s29 = smov 96   ;;  %s3543_s1 = inlined_call_operand.vmem [shape: f32[10,1568], index: 1, kind: input, shape index: {}]   ;;  %s3544_s0 = inlined_call_operand.vmem [shape: f32[2,10], index: 0, kind: input, shape index: {}]   ;;  %s3545_s4 = inlined_call_operand.vmem [shape: f32[224,224], index: 4, kind: input, shape index: {}]   ;;  %s3546_s3 = inlined_call_operand.vmem [shape: f32[224,224], index: 3, kind: input, shape index: {}]   ;;  %s3547_s2 = inlined_call_operand.vmem [shape: f32[1,1568], index: 2, kind: input, shape index: {}]   ;;  %s3548_s5 = inlined_call_operand.vmem [shape: f32[224,224], index: 5, kind: input, shape index: {}]   ;;  %s3549_s8 = inlined_call_operand.vmem [shape: f32[224,28], index: 8, kind: input, shape index: {}]   ;;  %s3550_s9 = inlined_call_operand.vmem [shape: f32[224,28], index: 9, kind: input, shape index: {}]   ;;  %s3551_s6 = inlined_call_operand.vmem [shape: f32[1,224], index: 6, kind: input, shape index: {}]   ;;  %s3552_s7 = inlined_call_operand.vmem [shape: f32[224,28], index: 7, kind: input, shape index: {}]   ;;  %s3553_s10 = inlined_call_operand.vmem [shape: f32[1,28], index: 10, kind: input, shape index: {}]   ;;  %s3554_s11 = inlined_call_operand.vmem [shape: f32[56,28], index: 11, kind: output, shape index: {}]  }
   0x1   :  { %v40_v0 = vld [vmem:[%s3543_s1 + $0x8] sm:$0xff]  ;;  %v53_v1 = vld [vmem:[%s3543_s1 + $0x70] sm:$0x3]  ;;  %vm2307_vm2 = vmpackc.low %vm138_vm0, %vm2234_vm1  ;;  %242 = vmatprep.mubr.f32.mxu0 %v2235_v3  ;;  %687 = vst [vmem:[#allocation2 + $0x10] sm:$0xc0] %v2235_v3  ;;  %313 = vmatprep.mubr.f32.mxu1 %v2235_v3  ;;  %v2236_v42 = vmov 0.0|0.0  }
   0x2   :  { %1236 = vst [vmem:[#allocation3 + $0x30] sm:$0x30] %v2235_v3  ;;  %v1857_v4 = vpack.c.bf16 %v53_v1, %v40_v0  ;;  %v42_v5 = vld [vmem:[%s3543_s1 + $0x18] sm:$0xff]  ;;  %v55_v6 = vld [vmem:[%s3543_s1 + $0x80] sm:$0x3]  ;;  %v41_v10 = vld [vmem:[%s3543_s1 + $0x10] sm:$0xff] }
   0x3   :  { %v39_v7 = vld [vmem:[%s3543_s1] sm:$0xff]  ;;  %v1863_v8 = vpack.c.bf16 %v55_v6, %v42_v5  ;;  %v52_v9 = vld [vmem:[%s3543_s1 + $0x68] sm:$0x3]  ;;  %v54_v11 = vld [vmem:[%s3543_s1 + $0x78] sm:$0x3]  ;;  %vm2237_vm4 = vmmov 0  }
   0x4   :  { %1859 = vmatprep.subr.msk.bf16.mxu0 %vm2307_vm2, %v1857_v4  ;;  %v1860_v12 = vpack.c.bf16 %v52_v9, %v39_v7  ;;  %v1866_v13 = vpack.c.bf16 %v54_v11, %v41_v10  ;;  %v38_v14 = vld [vmem:[%s3544_s0] sm:$0x3]  ;;  %v44_v15 = vld [vmem:[%s3543_s1 + $0x28] sm:$0xff]  ;;  %v57_v16 = vld [vmem:[%s3543_s1 + $0x90] sm:$0x3]  ;;  %vm691_vm5 = vcmask 779264  }
   0x5   :  { %1865 = vmatprep.subr.msk.bf16.mxu1 %vm2307_vm2, %v1863_v8  ;;  %v1869_v17 = vpack.c.bf16 %v57_v16, %v44_v15  ;;  %v43_v18 = vld [vmem:[%s3543_s1 + $0x20] sm:$0xff]  ;;  %v56_v19 = vld [vmem:[%s3543_s1 + $0x88] sm:$0x3]  ;;  %v46_v20 = vld [vmem:[%s3543_s1 + $0x38] sm:$0xff]  ;;  %vm688_vm6 = vcmask 785414   ;;  %vm730_vm7 = vcmask 783364  }
   0x6   :  { %1862 = vmatpush1.bf16.msk.msra.mxu0 %vm2307_vm2, %v1860_v12  ;;  %1868 = vmatpush1.bf16.msk.msra.mxu1 %vm2307_vm2, %v1866_v13  ;;  %v1872_v21 = vpack.c.bf16 %v56_v19, %v43_v18  ;;  %v59_v22 = vld [vmem:[%s3543_s1 + $0xa0] sm:$0x3]  ;;  %v45_v23 = vld [vmem:[%s3543_s1 + $0x30] sm:$0xff]  ;;  %v58_v24 = vld [vmem:[%s3543_s1 + $0x98] sm:$0x3]  ;;  %s2239_s0 = smov 64  }
   0x7   :  { %1871 = vmatprep.subr.msk.bf16.mxu0 %vm2307_vm2, %v1869_v17  ;;  %v1875_v25 = vpack.c.bf16 %v59_v22, %v46_v20  ;;  %v48_v26 = vld [vmem:[%s3543_s1 + $0x48] sm:$0xff]  ;;  %v61_v27 = vld [vmem:[%s3543_s1 + $0xb0] sm:$0x3]  ;;  %v47_v28 = vld [vmem:[%s3543_s1 + $0x40] sm:$0xff]  ;;  %v1878_v29 = vpack.c.bf16 %v58_v24, %v45_v23  ;;  %689 = vst.msk [vmem:[#allocation2 + $0x18] sm:$0xc0] %vm688_vm6, %v2235_v3 }
   0x8   :  { %v1881_v30 = vpack.c.bf16 %v61_v27, %v48_v26  ;;  %v60_v31 = vld [vmem:[%s3543_s1 + $0xa8] sm:$0x3]  ;;  %v50_v32 = vld [vmem:[%s3543_s1 + $0x58] sm:$0xff]  ;;  %v63_v33 = vld [vmem:[%s3543_s1 + $0xc0] sm:$0x3]  ;;  %vm705_vm8 = vcmask 261120  }
   0x9   :  { %1810 = vmatmul.mubr.msk.f32.vlgmr.msra.gmra.mrb[0].mxu0 %vm134_vm3, %v38_v14  ;;  %1813 = vmatmul.mubr.msk.f32.vlgmr.msra.gmra.mrb[0].mxu1 %vm134_vm3, %v38_v14  ;;  %v1887_v34 = vpack.c.bf16 %v63_v33, %v50_v32  ;;  %v49_v35 = vld [vmem:[%s3543_s1 + $0x50] sm:$0xff]  ;;  %v62_v36 = vld [vmem:[%s3543_s1 + $0xb8] sm:$0x3]  ;;  %v1884_v37 = vpack.c.bf16 %v60_v31, %v47_v28  ;;  %v51_v38 = vld [vmem:[%s3543_s1 + $0x60] sm:$0xff]  ;;  %1237 = vst.msk [vmem:[#allocation3 + $0x38] sm:$0x30] %vm730_vm7, %v2235_v3 }
   0xa   :  { %1874 = vmatpush1.bf16.msk.msra.mxu0 %vm2307_vm2, %v1872_v21  ;;  %384 = vmatprep.mubr.f32.mxu0 %v2235_v3  ;;  %v64_v39 = vld [vmem:[%s3543_s1 + $0xc8] sm:$0x3]  ;;  %v1890_v40 = vpack.c.bf16 %v62_v36, %v49_v35  ;;  %v794_v44 = vld [vmem:[%s3545_s4 + $0x18] sm:$0xff]  ;;  %v791_v45 = vld [vmem:[%s3545_s4] sm:$0xff]  ;;  %vm711_vm9 = vcmask 781314   ;;  %vm724_vm10 = vcmask 523264  }
   0xb   :  { %1877 = vmatprep.subr.msk.bf16.mxu1 %vm2307_vm2, %v1875_v25  ;;  %455 = vmatprep.mubr.f32.mxu1 %v2235_v3  ;;  %v1894_v41 = vpack.c.bf16 %v64_v39, %v51_v38  ;;  %v792_v43 = vld [vmem:[%s3545_s4 + $0x8] sm:$0xff]  ;;  %v793_v47 = vld [vmem:[%s3545_s4 + $0x10] sm:$0xff]  ;;  %v798_v49 = vld [vmem:[%s3545_s4 + $0x38] sm:$0xff]  ;;  %vm739_vm11 = vcmask 785408   ;;  %vm1061_vm12 = vcmask 1045504   ;;  %vm1778_vm13 = vcmask 226308  }
   0xc   :  { %1880 = vmatpush1.bf16.msk.msra.mxu1 %vm2307_vm2, %v1878_v29  ;;  %1883 = vmatprep.subr.msk.bf16.mxu0 %vm2307_vm2, %v1881_v30  ;;  %v1897_v46 = vpack.c.bf16 %v794_v44, %v792_v43  ;;  %v796_v48 = vld [vmem:[%s3545_s4 + $0x28] sm:$0xff]  ;;  %v1899_v50 = vpack.c.bf16 %v793_v47, %v791_v45  ;;  %v795_v52 = vld [vmem:[%s3545_s4 + $0x20] sm:$0xff]  ;;  %v797_v53 = vld [vmem:[%s3545_s4 + $0x30] sm:$0xff]  ;;  %vm1781_vm14 = vcmask 228358   ;;  %vm1772_vm15 = vcmask 222208  }
   0xd   :  { %1816 = vmatmul.mubr.msk.f32.vlgmr.msra.gmra.mrb[2].mxu0 %vm134_vm3, %v38_v14  ;;  %1889 = vmatprep.subr.msk.bf16.mxu1 %vm2307_vm2, %v1887_v34  ;;  %v1901_v51 = vpack.c.bf16 %v798_v49, %v796_v48  ;;  %v800_v54 = vld [vmem:[%s3545_s4 + $0x48] sm:$0xff]  ;;  %v802_v55 = vld [vmem:[%s3545_s4 + $0x58] sm:$0xff]  ;;  %v1903_v56 = vpack.c.bf16 %v797_v53, %v795_v52  ;;  %v799_v57 = vld [vmem:[%s3545_s4 + $0x40] sm:$0xff]  ;;  %vm1775_vm0 = vcmask 224258  }
   0xe   :  { %1886 = vmatpush1.bf16.msk.msra.mxu0 %vm2307_vm2, %v1884_v37  ;;  %526 = vmatprep.mubr.f32.mxu0 %v2235_v3  ;;  %v801_v58 = vld [vmem:[%s3545_s4 + $0x50] sm:$0xff]  ;;  %v1905_v59 = vpack.c.bf16 %v802_v55, %v800_v54  ;;  %v804_v60 = vld [vmem:[%s3545_s4 + $0x68] sm:$0xff]  ;;  %v1004_v62 = vld [vmem:[%s3546_s3 + $0x18] sm:$0xff] }
   0xf   :  { %1819 = vmatmul.mubr.msk.f32.vlgmr.msra.gmra.mrb[2].mxu1 %vm134_vm3, %v38_v14  ;;  %1893 = vmatprep.subr.bf16.mxu0 %v2236_v42  ;;  %v1002_v61 = vld [vmem:[%s3546_s3 + $0x8] sm:$0xff]  ;;  %v806_v63 = vld [vmem:[%s3545_s4 + $0x78] sm:$0xff]  ;;  %v1001_v1 = vld [vmem:[%s3546_s3] sm:$0xff]  ;;  %v1907_v5 = vpack.c.bf16 %v801_v58, %v799_v57 }
  0x10   :  { %1892 = vmatpush1.bf16.msk.msra.mxu1 %vm2307_vm2, %v1890_v40  ;;  %597 = vmatprep.mubr.f32.mxu1 %v2235_v3  ;;  %v1953_v0 = vpack.c.bf16 %v1004_v62, %v1002_v61  ;;  %v1003_v2 = vld [vmem:[%s3546_s3 + $0x10] sm:$0xff]  ;;  %v1006_v6 = vld [vmem:[%s3546_s3 + $0x28] sm:$0xff]  ;;  %v1008_v7 = vld [vmem:[%s3546_s3 + $0x38] sm:$0xff]  ;;  %v1909_v9 = vpack.c.bf16 %v806_v63, %v804_v60  ;;  %v69_v62 = vlaneseq }
  0x11   :  { %1822 = vmatmul.mubr.msk.f32.vlgmr.msra.gmra.mrb[4].mxu0 %vm134_vm3, %v38_v14  ;;  %1898 = vmatprep.subr.bf16.mxu1 %v1897_v46  ;;  %v1955_v4 = vpack.c.bf16 %v1003_v2, %v1001_v1  ;;  %v1005_v8 = vld [vmem:[%s3546_s3 + $0x20] sm:$0xff]  ;;  %v805_v11 = vld [vmem:[%s3545_s4 + $0x70] sm:$0xff]  ;;  %v1957_v12 = vpack.c.bf16 %v1008_v7, %v1006_v6  ;;  %v810_v15 = vld [vmem:[%s3545_s4 + $0x98] sm:$0xff] }
  0x12   :  { %1896 = vmatpush3.bf16.msk.msra.mxu0 %vm2307_vm2, %v1894_v41  ;;  %1854 = vmatprep.mubr.msk.f32.mxu0 %vm2237_vm4, %v2235_v3  ;;  %v803_v10 = vld [vmem:[%s3545_s4 + $0x60] sm:$0xff]  ;;  %v1007_v13 = vld [vmem:[%s3546_s3 + $0x30] sm:$0xff]  ;;  %v1010_v17 = vld [vmem:[%s3546_s3 + $0x48] sm:$0xff]  ;;  %v2591_v63 = vshrl.u32 %v69_v62, 7 }
  0x13   :  { %1825 = vmatmul.mubr.msk.f32.vlgmr.msra.gmra.mrb[4].mxu1 %vm134_vm3, %v38_v14  ;;  %1954 = vmatprep.subr.bf16.mxu0 %v1953_v0  ;;  %v1959_v16 = vpack.c.bf16 %v1007_v13, %v1005_v8  ;;  %v1012_v18 = vld [vmem:[%s3546_s3 + $0x58] sm:$0xff]  ;;  %v1009_v19 = vld [vmem:[%s3546_s3 + $0x40] sm:$0xff]  ;;  %v1011_v20 = vld [vmem:[%s3546_s3 + $0x50] sm:$0xff]  ;;  %v1911_v21 = vpack.c.bf16 %v805_v11, %v803_v10 }
  0x14   :  { %1900 = vmatpush1.bf16.msra.mxu1 %v1899_v50  ;;  %v807_v22 = vld [vmem:[%s3545_s4 + $0x80] sm:$0xff]  ;;  %v809_v23 = vld [vmem:[%s3545_s4 + $0x90] sm:$0xff]  ;;  %v1961_v24 = vpack.c.bf16 %v1012_v18, %v1010_v17  ;;  %v812_v26 = vld [vmem:[%s3545_s4 + $0xa8] sm:$0xff]  ;;  %v1963_v27 = vpack.c.bf16 %v1011_v20, %v1009_v19  ;;  %v2612_v8 = vsub.s32 0, %v2591_v63  ;;  %v2619_v13 = vsub.s32 1, %v2591_v63 }
  0x15   :  { %1855 = vmatmul.mubr.msk.f32.vlgmr.msra.gmra.mrb[6].mxu0 %vm134_vm3, %v38_v14  ;;  %1902 = vmatprep.subr.bf16.mxu1 %v1901_v51  ;;  %v808_v14 = vld [vmem:[%s3545_s4 + $0x88] sm:$0xff]  ;;  %v1016_v29 = vld [vmem:[%s3546_s3 + $0x78] sm:$0xff]  ;;  %v1013_v32 = vld [vmem:[%s3546_s3 + $0x60] sm:$0xff]  ;;  %v1915_v34 = vpack.c.bf16 %v809_v23, %v807_v22  ;;  %v91_v22 = vsub.s32 5, %v2591_v63 }
  0x16   :  { %1956 = vmatpush1.bf16.msra.mxu0 %v1955_v4  ;;  %v1913_v25 = vpack.c.bf16 %v810_v15, %v808_v14  ;;  %v1014_v28 = vld [vmem:[%s3546_s3 + $0x68] sm:$0xff]  ;;  %v814_v30 = vld [vmem:[%s3545_s4 + $0xb8] sm:$0xff]  ;;  %v1015_v33 = vld [vmem:[%s3546_s3 + $0x70] sm:$0xff]  ;;  %v83_v14 = vsub.s32 3, %v2591_v63 }
  0x17   :  { %1958 = vmatprep.subr.bf16.mxu0 %v1957_v12  ;;  %v1965_v31 = vpack.c.bf16 %v1016_v29, %v1014_v28  ;;  %v1018_v35 = vld [vmem:[%s3546_s3 + $0x88] sm:$0xff]  ;;  %v1020_v36 = vld [vmem:[%s3546_s3 + $0x98] sm:$0xff]  ;;  %v1917_v37 = vpack.c.bf16 %v814_v30, %v812_v26  ;;  %v811_v38 = vld [vmem:[%s3545_s4 + $0xa0] sm:$0xff]  ;;  %v1967_v41 = vpack.c.bf16 %v1015_v33, %v1013_v32  ;;  %v95_v33 = vsub.s32 6, %v2591_v63 }
  0x18   :  { %1904 = vmatpush1.bf16.msra.mxu1 %v1903_v56  ;;  %v813_v39 = vld [vmem:[%s3545_s4 + $0xb0] sm:$0xff]  ;;  %v816_v40 = vld [vmem:[%s3545_s4 + $0xc8] sm:$0xff]  ;;  %v818_v43 = vld [vmem:[%s3545_s4 + $0xd8] sm:$0xff]  ;;  %v1969_v44 = vpack.c.bf16 %v1020_v36, %v1018_v35  ;;  %v99_v36 = vsub.s32 7, %v2591_v63 }
  0x19   :  { %1906 = vmatprep.subr.bf16.mxu1 %v1905_v59  ;;  %v1017_v45 = vld [vmem:[%s3546_s3 + $0x80] sm:$0xff]  ;;  %v1019_v46 = vld [vmem:[%s3546_s3 + $0x90] sm:$0xff]  ;;  %v1919_v47 = vpack.c.bf16 %v813_v39, %v811_v38  ;;  %v1921_v48 = vpack.c.bf16 %v818_v43, %v816_v40  ;;  %v820_v52 = vld [vmem:[%s3545_s4 + $0xe8] sm:$0xff] }
  0x1a   :  { %1960 = vmatpush1.bf16.msra.mxu0 %v1959_v16  ;;  %v815_v49 = vld [vmem:[%s3545_s4 + $0xc0] sm:$0xff]  ;;  %v817_v50 = vld [vmem:[%s3545_s4 + $0xd0] sm:$0xff]  ;;  %v1971_v51 = vpack.c.bf16 %v1019_v46, %v1017_v45  ;;  %v822_v53 = vld [vmem:[%s3545_s4 + $0xf8] sm:$0xff] }
  0x1b   :  { %1962 = vmatprep.subr.bf16.mxu0 %v1961_v24  ;;  %v1923_v54 = vpack.c.bf16 %v817_v50, %v815_v49  ;;  %v1925_v55 = vpack.c.bf16 %v822_v53, %v820_v52  ;;  %v819_v56 = vld [vmem:[%s3545_s4 + $0xe0] sm:$0xff]  ;;  %v821_v57 = vld [vmem:[%s3545_s4 + $0xf0] sm:$0xff]  ;;  %v824_v58 = vld [vmem:[%s3545_s4 + $0x108] sm:$0xff] }
  0x1c   :  { %1908 = vmatpush1.bf16.msra.mxu1 %v1907_v5  ;;  %v826_v59 = vld [vmem:[%s3545_s4 + $0x118] sm:$0xff]  ;;  %v1927_v60 = vpack.c.bf16 %v821_v57, %v819_v56  ;;  %v823_v0 = vld [vmem:[%s3545_s4 + $0x100] sm:$0xff]  ;;  %v825_v1 = vld [vmem:[%s3545_s4 + $0x110] sm:$0xff] }
  0x1d   :  { %1910 = vmatprep.subr.bf16.mxu1 %v1909_v9  ;;  %v1929_v61 = vpack.c.bf16 %v826_v59, %v824_v58  ;;  %v1022_v2 = vld [vmem:[%s3546_s3 + $0xa8] sm:$0xff]  ;;  %v1931_v4 = vpack.c.bf16 %v825_v1, %v823_v0  ;;  %v1024_v5 = vld [vmem:[%s3546_s3 + $0xb8] sm:$0xff]  ;;  %v1021_v6 = vld [vmem:[%s3546_s3 + $0xa0] sm:$0xff]  ;;  %v79_v9 = vsub.s32 2, %v2591_v63 }
  0x1e   :  { %1964 = vmatpush1.bf16.msra.mxu0 %v1963_v27  ;;  %v1023_v7 = vld [vmem:[%s3546_s3 + $0xb0] sm:$0xff]  ;;  %v1973_v10 = vpack.c.bf16 %v1024_v5, %v1022_v2  ;;  %v65_v12 = vld [vmem:[%s3547_s2] sm:$0xff]  ;;  %v828_v15 = vld [vmem:[%s3545_s4 + $0x128] sm:$0xff] }
  0x1f   :  { %1966 = vmatprep.subr.bf16.mxu0 %v1965_v31  ;;  %v1975_v11 = vpack.c.bf16 %v1023_v7, %v1021_v6  ;;  %v830_v16 = vld [vmem:[%s3545_s4 + $0x138] sm:$0xff]  ;;  %v827_v18 = vld [vmem:[%s3545_s4 + $0x120] sm:$0xff]  ;;  %v829_v19 = vld [vmem:[%s3545_s4 + $0x130] sm:$0xff]  ;;  %v72_v27 = vrot.slane %v65_v12, %v2612_v8  ;;  %v80_v28 = vrot.slane %v65_v12, %v79_v9  ;;  %v76_v31 = vrot.slane %v65_v12, %v2619_v13 }
  0x20   :  { %1912 = vmatpush1.bf16.msra.mxu1 %v1911_v21  ;;  %v1933_v17 = vpack.c.bf16 %v830_v16, %v828_v15  ;;  %v1026_v20 = vld [vmem:[%s3546_s3 + $0xc8] sm:$0xff]  ;;  %v87_v21 = vsub.s32 4, %v2591_v63  ;;  %v1935_v23 = vpack.c.bf16 %v829_v19, %v827_v18  ;;  %v1028_v24 = vld [vmem:[%s3546_s3 + $0xd8] sm:$0xff]  ;;  %v1027_v26 = vld [vmem:[%s3546_s3 + $0xd0] sm:$0xff]  ;;  %v84_v32 = vrot.slane %v65_v12, %v83_v14 }
  0x21   :  { %1914 = vmatprep.subr.bf16.mxu1 %v1913_v25  ;;  %v1025_v25 = vld [vmem:[%s3546_s3 + $0xc0] sm:$0xff]  ;;  %v1977_v29 = vpack.c.bf16 %v1028_v24, %v1026_v20  ;;  %v834_v35 = vld [vmem:[%s3545_s4 + $0x158] sm:$0xff]  ;;  %v833_v39 = vld [vmem:[%s3545_s4 + $0x150] sm:$0xff]  ;;  %v2673_v45 = vrot.slane %v65_v12, %v91_v22  ;;  %v96_v59 = vrot.slane %v65_v12, %v95_v33  ;;  %v100_v1 = vrot.slane %v65_v12, %v99_v36 }
  0x22   :  { %1968 = vmatpush1.bf16.msra.mxu0 %v1967_v41  ;;  %v1979_v30 = vpack.c.bf16 %v1027_v26, %v1025_v25  ;;  %v831_v38 = vld [vmem:[%s3545_s4 + $0x140] sm:$0xff]  ;;  %v1030_v40 = vld [vmem:[%s3546_s3 + $0xe8] sm:$0xff]  ;;  %v1031_v49 = vld [vmem:[%s3546_s3 + $0xf0] sm:$0xff] }
  0x23   :  { %1970 = vmatprep.subr.bf16.mxu0 %v1969_v44  ;;  %v88_v44 = vrot.slane %v65_v12, %v87_v21  ;;  %v1939_v46 = vpack.c.bf16 %v833_v39, %v831_v38  ;;  %v837_v5 = vld [vmem:[%s3545_s4 + $0x170] sm:$0xff]  ;;  %v1034_v6 = vld [vmem:[%s3546_s3 + $0x108] sm:$0xff]  ;;  %v1036_v16 = vld [vmem:[%s3546_s3 + $0x118] sm:$0xff] }
  0x24   :  { %1916 = vmatpush1.bf16.msra.mxu1 %v1915_v34  ;;  %v832_v34 = vld [vmem:[%s3545_s4 + $0x148] sm:$0xff]  ;;  %v1035_v18 = vld [vmem:[%s3546_s3 + $0x110] sm:$0xff] }
  0x25   :  { %1918 = vmatprep.subr.bf16.mxu1 %v1917_v37  ;;  %v1937_v37 = vpack.c.bf16 %v834_v35, %v832_v34  ;;  %v841_v35 = vld [vmem:[%s3545_s4 + $0x190] sm:$0xff]  ;;  %v1038_v36 = vld [vmem:[%s3546_s3 + $0x128] sm:$0xff] }
  0x26   :  { %1972 = vmatpush1.bf16.msra.mxu0 %v1971_v51 }
  0x27   :  { %1974 = vmatprep.subr.bf16.mxu0 %v1973_v10 }
  0x28   :  { %1920 = vmatpush1.bf16.msra.mxu1 %v1919_v47  ;;  %v1032_v47 = vld [vmem:[%s3546_s3 + $0xf8] sm:$0xff] }
  0x29   :  { %1922 = vmatprep.subr.bf16.mxu1 %v1921_v48  ;;  %v1029_v48 = vld [vmem:[%s3546_s3 + $0xe0] sm:$0xff] }
  0x2a   :  { %1976 = vmatpush1.bf16.msra.mxu0 %v1975_v11  ;;  %v1983_v56 = vpack.c.bf16 %v1031_v49, %v1029_v48 }
  0x2b   :  { %1978 = vmatprep.subr.bf16.mxu0 %v1977_v29  ;;  %v840_v29 = vld [vmem:[%s3545_s4 + $0x188] sm:$0xff] }
  0x2c   :  { %1924 = vmatpush1.bf16.msra.mxu1 %v1923_v54  ;;  %v2687_v54 = vld [vmem:[%s3547_s2 + $0x8] sm:$0x1f] }
  0x2d   :  { %1926 = vmatprep.subr.bf16.mxu1 %v1925_v55  ;;  %v1981_v55 = vpack.c.bf16 %v1032_v47, %v1030_v40  ;;  %v104_v12 = vrot.slane %v2687_v54, %v2612_v8 }
  0x2e   :  { %1980 = vmatpush1.bf16.msra.mxu0 %v1979_v30  ;;  %v842_v30 = vld [vmem:[%s3545_s4 + $0x198] sm:$0xff] }
  0x2f   :  { %1982 = vmatprep.subr.bf16.mxu0 %v1981_v55  ;;  %v1945_v34 = vpack.c.bf16 %v842_v30, %v840_v29  ;;  %v1050_v29 = vld [vmem:[%s3546_s3 + $0x188] sm:$0xff]  ;;  %v1052_v30 = vld [vmem:[%s3546_s3 + $0x198] sm:$0xff] }
  0x30   :  { %1928 = vmatpush1.bf16.msra.mxu1 %v1927_v60  ;;  %v836_v60 = vld [vmem:[%s3545_s4 + $0x168] sm:$0xff] }
  0x31   :  { %1930 = vmatprep.subr.bf16.mxu1 %v1929_v61  ;;  %v838_v61 = vld [vmem:[%s3545_s4 + $0x178] sm:$0xff] }
  0x32   :  { %v1941_v2 = vpack.c.bf16 %v838_v61, %v836_v60  ;;  %1984 = vmatpush1.bf16.msra.mxu0 %v1983_v56  ;;  %v843_v61 = vld [vmem:[%s3545_s4 + $0x1a0] sm:$0xff] }
  0x34   :  { %1932 = vmatpush1.bf16.msra.mxu1 %v1931_v4  ;;  %v835_v4 = vld [vmem:[%s3545_s4 + $0x160] sm:$0xff] }
  0x35   :  { %1934 = vmatprep.subr.bf16.mxu1 %v1933_v17  ;;  %v1943_v15 = vpack.c.bf16 %v837_v5, %v835_v4  ;;  %v1033_v17 = vld [vmem:[%s3546_s3 + $0x100] sm:$0xff] }
  0x36   :  { %v1987_v24 = vpack.c.bf16 %v1035_v18, %v1033_v17 }
  0x38   :  { %1936 = vmatpush1.bf16.msra.mxu1 %v1935_v23  ;;  %v1985_v23 = vpack.c.bf16 %v1036_v16, %v1034_v6  ;;  %v1044_v6 = vld [vmem:[%s3546_s3 + $0x158] sm:$0xff]  ;;  %v116_v16 = vrot.slane %v2687_v54, %v83_v14 }
  0x39   :  { %1938 = vmatprep.subr.bf16.mxu1 %v1937_v37 }
  0x3a   :  { %1986 = vmatprep.subr.bf16.mxu0 %v1985_v23  ;;  %v1047_v23 = vld [vmem:[%s3546_s3 + $0x170] sm:$0xff] }
  0x3b   :  { %1988 = vmatpush1.bf16.msra.mxu0 %v1987_v24 }
  0x3c   :  { %1940 = vmatpush1.bf16.msra.mxu1 %v1939_v46 }
  0x3d   :  { %1942 = vmatprep.subr.bf16.mxu1 %v1941_v2 }
  0x40   :  { %1944 = vmatpush1.bf16.msra.mxu1 %v1943_v15 }
  0x41   :  { %1946 = vmatprep.subr.bf16.mxu1 %v1945_v34  ;;  %v1049_v34 = vld [vmem:[%s3546_s3 + $0x180] sm:$0xff] }
  0xdc   :  { %v244_v41 = vpop.f32.mrb[0].mxu0  ;;  %v315_v43 = vpop.f32.mrb[0].mxu1 }
  0xdd   :  { %v245_v50 = vadd.f32 %v244_v41, %v72_v27  ;;  %v316_v51 = vadd.f32 %v315_v43, %v80_v28  ;;  %v246_v52 = vpop.f32.mrb[1].mxu0  ;;  %v317_v53 = vpop.f32.mrb[1].mxu1  ;;  %v108_v27 = vrot.slane %v2687_v54, %v2619_v13  ;;  %v112_v28 = vrot.slane %v2687_v54, %v79_v9  ;;  %v839_v9 = vld [vmem:[%s3545_s4 + $0x180] sm:$0xff]  ;;  %v1040_v43 = vld [vmem:[%s3546_s3 + $0x138] sm:$0xff] }
  0xde   :  { %v2689_v57 = vadd.f32 %v246_v52, %v76_v31  ;;  %v318_v58 = vadd.f32 %v317_v53, %v84_v32  ;;  %v1947_v41 = vpack.c.bf16 %v841_v35, %v839_v9  ;;  %v1989_v3 = vpack.c.bf16 %v1040_v43, %v1038_v36  ;;  %v844_v52 = vld [vmem:[%s3545_s4 + $0x1a8] sm:$0xff]  ;;  %v846_v53 = vld [vmem:[%s3545_s4 + $0x1b8] sm:$0xff]  ;;  %v1051_v9 = vld [vmem:[%s3546_s3 + $0x190] sm:$0xff] }
  0xdf   :  { %v674_v62 = vmax.f32 %v245_v50, 0.0  ;;  %v676_v0 = vmax.f32 %v316_v51, 0.0  ;;  %v1949_v4 = vpack.c.bf16 %v846_v53, %v844_v52  ;;  %v2003_v36 = vpack.c.bf16 %v1051_v9, %v1049_v34  ;;  %v1055_v43 = vld [vmem:[%s3546_s3 + $0x1b0] sm:$0xff]  ;;  %v954_v9 = vld [vmem:[%s3548_s5 + $0x48] sm:$0xff] }
  0xe0   :  { %v675_v7 = vmax.f32 %v2689_v57, 0.0  ;;  %v677_v10 = vmax.f32 %v318_v58, 0.0  ;;  %v386_v11 = vpop.f32.mrb[2].mxu0  ;;  %1948 = vmatpush1.bf16.msra.mxu1 %v1947_v41  ;;  %1990 = vmatprep.subr.bf16.mxu0 %v1989_v3  ;;  %v1046_v57 = vld [vmem:[%s3546_s3 + $0x168] sm:$0xff]  ;;  %v1053_v41 = vld [vmem:[%s3546_s3 + $0x1a0] sm:$0xff] }
  0xe1   :  { %690 = vst [vmem:[#allocation2] sm:$0x3] %v674_v62  ;;  %v387_v19 = vadd.f32 %v386_v11, %v88_v44  ;;  %v388_v20 = vpop.f32.mrb[3].mxu0  ;;  %v697_v22 = vrot.slane %v676_v0, 6  ;;  %v1037_v44 = vld [vmem:[%s3546_s3 + $0x120] sm:$0xff]  ;;  %v845_v62 = vld [vmem:[%s3545_s4 + $0x1b0] sm:$0xff]  ;;  %1950 = vmatprep.subr.bf16.mxu1 %v1949_v4 }
  0xe2   :  { %692 = vst.msk [vmem:[#allocation2 + $0x8] sm:$0x3] %vm691_vm5, %v675_v7  ;;  %v457_v25 = vpop.f32.mrb[2].mxu1  ;;  %v715_v26 = vrot.slane %v677_v10, 4  ;;  %v698_v37 = vrot.slane %v677_v10, 6  ;;  %v2745_v38 = vadd.f32 %v388_v20, %v2673_v45  ;;  %v1039_v45 = vld [vmem:[%s3546_s3 + $0x130] sm:$0xff]  ;;  %v1951_v5 = vpack.c.bf16 %v845_v62, %v843_v61 }
  0xe3   :  { %v678_v31 = vmax.f32 %v387_v19, 0.0  ;;  %701 = vrot.lane.b32.xlu0 %v697_v22, %s2238_s18  ;;  %v458_v32 = vadd.f32 %v457_v25, %v96_v59  ;;  %v459_v33 = vpop.f32.mrb[3].mxu1  ;;  %v120_v59 = vrot.slane %v2687_v54, %v87_v21  ;;  %v1991_v60 = vpack.c.bf16 %v1039_v45, %v1037_v44  ;;  %v1042_v0 = vld [vmem:[%s3546_s3 + $0x148] sm:$0xff]  ;;  %v1041_v10 = vld [vmem:[%s3546_s3 + $0x140] sm:$0xff]  ;;  %v1043_v11 = vld [vmem:[%s3546_s3 + $0x150] sm:$0xff] }
  0xe4   :  { %718 = vrot.lane.b32.xlu1 %v715_v26, %s2239_s0  ;;  %v460_v39 = vadd.f32 %v459_v33, %v100_v1  ;;  %v528_v40 = vpop.f32.mrb[4].mxu0  ;;  %v679_v15 = vmax.f32 %v2745_v38, 0.0  ;;  %v1993_v18 = vpack.c.bf16 %v1044_v6, %v1042_v0  ;;  %v1995_v19 = vpack.c.bf16 %v1043_v11, %v1041_v10  ;;  %1952 = vmatpush1.bf16.msra.mxu1 %v1951_v5  ;;  %v1045_v22 = vld [vmem:[%s3546_s3 + $0x160] sm:$0xff]  ;;  %v1056_v38 = vld [vmem:[%s3546_s3 + $0x1b8] sm:$0xff] }
  0xe5   :  { %v716_v46 = vrot.slane %v678_v31, 4  ;;  %v680_v47 = vmax.f32 %v458_v32, 0.0  ;;  %v2759_v48 = vadd.f32 %v528_v40, %v104_v12  ;;  %v530_v49 = vpop.f32.mrb[5].mxu0  ;;  %v696_v12 = vrot.slane %v675_v7, 6  ;;  %1992 = vmatpush1.bf16.msra.mxu0 %v1991_v60  ;;  %v1048_v7 = vld [vmem:[%s3546_s3 + $0x178] sm:$0xff]  ;;  %2065 = vmatprep.subr.bf16.mxu1 %v2236_v42 }
  0xe6   :  { %v681_v50 = vmax.f32 %v460_v39, 0.0  ;;  %v599_v51 = vpop.f32.mrb[4].mxu1  ;;  %v531_v56 = vadd.f32 %v530_v49, %v108_v27  ;;  %1994 = vmatprep.subr.bf16.mxu0 %v1993_v18  ;;  %v1997_v54 = vpack.c.bf16 %v1048_v7, %v1046_v57  ;;  %v733_v24 = vrot.slane %v679_v15, 2 }
  0xe7   :  { %703 = vrot.lane.b32.xlu0 %v698_v37, %s2238_s18  ;;  %v682_v55 = vmax.f32 %v2759_v48, 0.0  ;;  %v601_v58 = vpop.f32.mrb[5].mxu1  ;;  %v734_v1 = vrot.slane %v680_v47, 2  ;;  %v2782_v2 = vadd.f32 %v599_v51, %v112_v28  ;;  %v1999_v26 = vpack.c.bf16 %v1047_v23, %v1045_v22  ;;  %v1054_v37 = vld [vmem:[%s3546_s3 + $0x1a8] sm:$0xff]  ;;  %v948_v47 = vld [vmem:[%s3548_s5 + $0x18] sm:$0xff]  ;;  %v947_v22 = vld [vmem:[%s3548_s5 + $0x10] sm:$0xff] }
  0xe8   :  { %745 = vst [vmem:[#allocation2 + $0x10] sm:$0x3] %v681_v50  ;;  %720 = vrot.lane.b32.xlu1 %v716_v46, %s2239_s0  ;;  %v670_v21 = vpop.f32.mrb[6].mxu0  ;;  %v683_v20 = vmax.f32 %v531_v56, 0.0  ;;  %v602_v25 = vadd.f32 %v601_v58, %v116_v16  ;;  %v717_v27 = vrot.slane %v679_v15, 4  ;;  %v2001_v33 = vpack.c.bf16 %v1052_v30, %v1050_v29  ;;  %v946_v46 = vld [vmem:[%s3548_s5 + $0x8] sm:$0xff] }
  0xe9   :  { %746 = vst.msk [vmem:[#allocation2 + $0x18] sm:$0x3] %vm691_vm5, %v682_v55  ;;  %v1856_v17 = vpop.f32.mrb[7].mxu0  ;;  %v684_v63 = vmax.f32 %v2782_v2, 0.0  ;;  %v671_v14 = vadd.f32 %v670_v21, %v120_v59  ;;  %1996 = vmatpush1.bf16.msra.mxu0 %v1995_v19  ;;  %v2005_v40 = vpack.c.bf16 %v1056_v38, %v1054_v37  ;;  %v2007_v45 = vpack.c.bf16 %v1055_v43, %v1053_v41  ;;  %v953_v38 = vld [vmem:[%s3548_s5 + $0x40] sm:$0xff]  ;;  %v960_v41 = vld [vmem:[%s3548_s5 + $0x78] sm:$0xff] }
  0xea   :  { %1998 = vmatprep.subr.bf16.mxu0 %v1997_v54  ;;  %v751_v28 = vrot.slane %v683_v20, 6  ;;  %v685_v35 = vmax.f32 %v602_v25, 0.0  ;;  %v2009_v49 = vpack.c.bf16 %v948_v47, %v946_v46  ;;  %v750_v3 = vrot.slane %v682_v55, 6  ;;  %v945_v54 = vld [vmem:[%s3548_s5] sm:$0xff]  ;;  %v952_v25 = vld [vmem:[%s3548_s5 + $0x38] sm:$0xff]  ;;  %v959_v46 = vld [vmem:[%s3548_s5 + $0x70] sm:$0xff] }
  0xeb   :  { %699 = vrot.lane.b32.xlu0 %v696_v12, %s2238_s18  ;;  %v752_v31 = vrot.slane %v684_v63, 6  ;;  %v686_v32 = vmax.f32 %v671_v14, 0.0  ;;  %v767_v50 = vrot.slane %v684_v63, 4  ;;  %v2011_v30 = vpack.c.bf16 %v947_v22, %v945_v54  ;;  %v962_v47 = vld [vmem:[%s3548_s5 + $0x88] sm:$0xff]  ;;  %v981_v22 = vld [vmem:[%s3548_s5 + $0x120] sm:$0xff] }
  0xec   :  { %737 = vrot.lane.b32.xlu1 %v734_v1, %s2240_s29  ;;  %v768_v44 = vrot.slane %v685_v35, 4  ;;  %v956_v35 = vld [vmem:[%s3548_s5 + $0x58] sm:$0xff] }
  0xed   :  { %2000 = vmatpush1.bf16.msra.mxu0 %v1999_v26  ;;  %v769_v39 = vrot.slane %v686_v32, 4  ;;  %v949_v32 = vld [vmem:[%s3548_s5 + $0x20] sm:$0xff]  ;;  %v2017_v37 = vpack.c.bf16 %v956_v35, %v954_v9  ;;  %v991_v35 = vld [vmem:[%s3548_s5 + $0x170] sm:$0xff] }
  0xee   :  { %2002 = vmatprep.subr.bf16.mxu0 %v2001_v33  ;;  %v951_v33 = vld [vmem:[%s3548_s5 + $0x30] sm:$0xff]  ;;  %v989_v9 = vld [vmem:[%s3548_s5 + $0x160] sm:$0xff] }
  0xef   :  { %735 = vrot.lane.b32.xlu0 %v733_v24, %s2240_s29  ;;  %v950_v24 = vld [vmem:[%s3548_s5 + $0x28] sm:$0xff] }
  0xf0   :  { %722 = vrot.lane.b32.xlu1 %v717_v27, %s2239_s0 }
  0xf1   :  { %2004 = vmatpush1.bf16.msra.mxu0 %v2003_v36  ;;  %v2015_v36 = vpack.c.bf16 %v951_v33, %v949_v32  ;;  %v992_v32 = vld [vmem:[%s3548_s5 + $0x178] sm:$0xff] }
  0xf2   :  { %2006 = vmatprep.subr.bf16.mxu0 %v2005_v40  ;;  %v958_v40 = vld [vmem:[%s3548_s5 + $0x68] sm:$0xff] }
  0xf3   :  { %755 = vrot.lane.b32.xlu0 %v751_v28, %s2238_s18 }
  0xf4   :  { %757 = vrot.lane.b32.xlu1 %v752_v31, %s2238_s18  ;;  %v2013_v31 = vpack.c.bf16 %v952_v25, %v950_v24  ;;  %v986_v24 = vld [vmem:[%s3548_s5 + $0x148] sm:$0xff]  ;;  %v988_v25 = vld [vmem:[%s3548_s5 + $0x158] sm:$0xff] }
  0xf5   :  { %2008 = vmatpush1.bf16.msra.mxu0 %v2007_v45  ;;  %v957_v45 = vld [vmem:[%s3548_s5 + $0x60] sm:$0xff] }
  0xf6   :  { %2010 = vmatprep.subr.bf16.mxu0 %v2009_v49  ;;  %v964_v49 = vld [vmem:[%s3548_s5 + $0x98] sm:$0xff] }
  0xf7   :  { %772 = vrot.lane.b32.xlu0 %v768_v44, %s2239_s0  ;;  %v2021_v44 = vpack.c.bf16 %v960_v41, %v958_v40  ;;  %v993_v40 = vld [vmem:[%s3548_s5 + $0x180] sm:$0xff]  ;;  %v995_v41 = vld [vmem:[%s3548_s5 + $0x190] sm:$0xff] }
  0xf8   :  { %774 = vrot.lane.b32.xlu1 %v769_v39, %s2239_s0  ;;  %v955_v39 = vld [vmem:[%s3548_s5 + $0x50] sm:$0xff] }
  0xf9   :  { %v2019_v43 = vpack.c.bf16 %v955_v39, %v953_v38  ;;  %v2055_v38 = vpack.c.bf16 %v991_v35, %v989_v9 }
  0xfb   :  { %753 = vrot.lane.b32.xlu0 %v750_v3, %s2238_s18  ;;  %v2023_v3 = vpack.c.bf16 %v959_v46, %v957_v45  ;;  %v2059_v45 = vpack.c.bf16 %v995_v41, %v993_v40 }
  0xfc   :  { %770 = vrot.lane.b32.xlu1 %v767_v50, %s2239_s0  ;;  %v2025_v50 = vpack.c.bf16 %v964_v49, %v962_v47  ;;  %v997_v47 = vld [vmem:[%s3548_s5 + $0x1a0] sm:$0xff]  ;;  %v999_v49 = vld [vmem:[%s3548_s5 + $0x1b0] sm:$0xff] }
 0x155   :  { %v702_v51 = vpop.permute.xlu0 %701 }
 0x156   :  { %v719_v52 = vpop.permute.xlu1 %718 }
 0x159   :  { %v704_v53 = vpop.permute.xlu0 %703 }
 0x15a   :  { %v707_v56 = vsel %vm705_vm8, %v702_v51, %v704_v53  ;;  %v721_v58 = vpop.permute.xlu1 %720  ;;  %v966_v53 = vld [vmem:[%s3548_s5 + $0xa8] sm:$0xff] }
 0x15b   :  { %712 = vst.msk [vmem:[#allocation2 + $0x8] sm:$0xc] %vm711_vm9, %v707_v56  ;;  %v725_v48 = vsel %vm724_vm10, %v719_v52, %v721_v58  ;;  %v963_v52 = vld [vmem:[%s3548_s5 + $0x90] sm:$0xff]  ;;  %v968_v56 = vld [vmem:[%s3548_s5 + $0xb8] sm:$0xff] }
 0x15c   :  { %729 = vst [vmem:[#allocation2] sm:$0x30] %v725_v48  ;;  %v2029_v48 = vpack.c.bf16 %v968_v56, %v966_v53 }
 0x15d   :  { %v700_v55 = vpop.permute.xlu0 %699 }
 0x15e   :  { %v706_v59 = vsel %vm705_vm8, %v700_v55, %v702_v51  ;;  %v738_v60 = vpop.permute.xlu1 %737  ;;  %v961_v51 = vld [vmem:[%s3548_s5 + $0x80] sm:$0xff] }
 0x15f   :  { %710 = vst [vmem:[#allocation2] sm:$0xc] %v706_v59  ;;  %744 = vst.msk [vmem:[#allocation2 + $0x8] sm:$0xc0] %vm688_vm6, %v738_v60  ;;  %v965_v55 = vld [vmem:[%s3548_s5 + $0xa0] sm:$0xff]  ;;  %v967_v59 = vld [vmem:[%s3548_s5 + $0xb0] sm:$0xff] }
 0x161   :  { %v736_v61 = vpop.permute.xlu0 %735 }
 0x162   :  { %v740_v62 = vsel %vm739_vm11, %v736_v61, %v738_v60  ;;  %v723_v0 = vpop.permute.xlu1 %722  ;;  %v970_v60 = vld [vmem:[%s3548_s5 + $0xc8] sm:$0xff]  ;;  %v972_v61 = vld [vmem:[%s3548_s5 + $0xd8] sm:$0xff] }
 0x163   :  { %743 = vst [vmem:[#allocation2] sm:$0xc0] %v740_v62  ;;  %v726_v1 = vsel %vm724_vm10, %v721_v58, %v723_v0  ;;  %v2027_v58 = vpack.c.bf16 %v963_v52, %v961_v51  ;;  %v2031_v62 = vpack.c.bf16 %v967_v59, %v965_v55  ;;  %v2033_v0 = vpack.c.bf16 %v972_v61, %v970_v60  ;;  %v1332_v51 = vld [vmem:[%s3549_s8 + $0x8] sm:$0xff]  ;;  %v1462_v52 = vld [vmem:[%s3550_s9] sm:$0xff] }
 0x164   :  { %731 = vst.msk [vmem:[#allocation2 + $0x8] sm:$0x30] %vm730_vm7, %v726_v1  ;;  %v969_v1 = vld [vmem:[%s3548_s5 + $0xc0] sm:$0xff]  ;;  %v1336_v61 = vld [vmem:[%s3549_s8 + $0x28] sm:$0xff] }
 0x165   :  { %v756_v2 = vpop.permute.xlu0 %755  ;;  %v1335_v60 = vld [vmem:[%s3549_s8 + $0x20] sm:$0xff] }
 0x166   :  { %v758_v21 = vpop.permute.xlu1 %757 }
 0x167   :  { %v760_v4 = vsel %vm705_vm8, %v756_v2, %v758_v21  ;;  %v974_v21 = vld [vmem:[%s3548_s5 + $0xe8] sm:$0xff] }
 0x168   :  { %764 = vst.msk [vmem:[#allocation2 + $0x18] sm:$0xc] %vm711_vm9, %v760_v4  ;;  %v976_v4 = vld [vmem:[%s3548_s5 + $0xf8] sm:$0xff] }
 0x169   :  { %v773_v5 = vpop.permute.xlu0 %772 }
 0x16a   :  { %v775_v6 = vpop.permute.xlu1 %774  ;;  %v2869_v12 = vld [vmem:[#allocation2] sm:$0xff] }
 0x16b   :  { %v777_v10 = vsel %vm724_vm10, %v773_v5, %v775_v6  ;;  %v783_v11 = vld [vmem:[#allocation2 + $0x8] sm:$0xff]  ;;  %v786_v14 = vld [vmem:[#allocation2] sm:$0xfc]  ;;  %v2037_v6 = vpack.c.bf16 %v976_v4, %v974_v21  ;;  %v1337_v21 = vld [vmem:[%s3549_s8 + $0x30] sm:$0xff] }
 0x16c   :  { %781 = vst.msk [vmem:[#allocation2 + $0x18] sm:$0x30] %vm730_vm7, %v777_v10  ;;  %1828 = vmatprep.mubr.msk.f32.mxu1 %vm739_vm11, %v783_v11  ;;  %v787_v19 = vld [vmem:[#allocation2 + $0x8] sm:$0xfc]  ;;  %v1062_v28 = vrot.slane %v786_v14, 2  ;;  %v973_v10 = vld [vmem:[%s3548_s5 + $0xe0] sm:$0xff] }
 0x16d   :  { %v754_v15 = vpop.permute.xlu0 %753  ;;  %929 = vmatmul.mubr.f32.vlgmr.msra.gmra.mrb[6].mxu1 %v2869_v12  ;;  %v1065_v7 = vrot.slane %v787_v19, 2  ;;  %v977_v19 = vld [vmem:[%s3548_s5 + $0x100] sm:$0xff]  ;;  %v1338_v4 = vld [vmem:[%s3549_s8 + $0x38] sm:$0xff] }
 0x16e   :  { %v759_v16 = vsel %vm705_vm8, %v754_v15, %v756_v2  ;;  %v771_v17 = vpop.permute.xlu1 %770  ;;  %v971_v2 = vld [vmem:[%s3548_s5 + $0xd0] sm:$0xff]  ;;  %v978_v15 = vld [vmem:[%s3548_s5 + $0x108] sm:$0xff] }
 0x16f   :  { %763 = vst [vmem:[#allocation2 + $0x10] sm:$0xc] %v759_v16  ;;  %v776_v18 = vsel %vm724_vm10, %v771_v17, %v773_v5  ;;  %v2035_v5 = vpack.c.bf16 %v971_v2, %v969_v1  ;;  %v980_v16 = vld [vmem:[%s3548_s5 + $0x118] sm:$0xff]  ;;  %v2072_v1 = vpack.c.bf16 %v1336_v61, %v1335_v60  ;;  %v1356_v60 = vld [vmem:[%s3549_s8 + $0xc8] sm:$0xff] }
 0x170   :  { %780 = vst [vmem:[#allocation2 + $0x10] sm:$0x30] %v776_v18  ;;  %v2041_v18 = vpack.c.bf16 %v980_v16, %v978_v15  ;;  %v1339_v15 = vld [vmem:[%s3549_s8 + $0x40] sm:$0xff]  ;;  %v1340_v16 = vld [vmem:[%s3549_s8 + $0x48] sm:$0xff] }
 0x173   :  { %v2874_v20 = vld [vmem:[#allocation2 + $0x18] sm:$0x3f] }
 0x174   :  { %v789_v57 = vld [vmem:[#allocation2 + $0x18] sm:$0xff]  ;;  %1829 = vmatprep.mubr.msk.f32.mxu1 %vm739_vm11, %v2874_v20 }
 0x175   :  { %v1066_v63 = vrot.slane %v789_v57, 2  ;;  %v979_v57 = vld [vmem:[%s3548_s5 + $0x110] sm:$0xff] }
 0x176   :  { %v2043_v14 = vpack.c.bf16 %v979_v57, %v977_v19  ;;  %v2078_v19 = vpack.c.bf16 %v1340_v16, %v1339_v15 }
 0x177   :  { %v1067_v23 = vsel %vm1061_vm12, %v1065_v7, %v1066_v63  ;;  %v2892_v26 = vld [vmem:[#allocation2 + $0x10] sm:$0x3f]  ;;  %v982_v7 = vld [vmem:[%s3548_s5 + $0x128] sm:$0xff] }
 0x178   :  { %1830 = vmatprep.mubr.msk.f32.mxu0 %vm739_vm11, %v1067_v23  ;;  %v788_v27 = vld [vmem:[#allocation2 + $0x10] sm:$0xff]  ;;  %935 = vmatmul.mubr.f32.gmra.mrb[8].mxu1 %v2892_v26 }
 0x179   :  { %v1063_v29 = vrot.slane %v788_v27, 2  ;;  %v983_v23 = vld [vmem:[%s3548_s5 + $0x130] sm:$0xff] }
 0x17a   :  { %v2047_v27 = vpack.c.bf16 %v983_v23, %v981_v22 }
 0x17b   :  { %v1064_v34 = vsel %vm1061_vm12, %v1062_v28, %v1063_v29  ;;  %v2049_v28 = vpack.c.bf16 %v988_v25, %v986_v24  ;;  %v1343_v24 = vld [vmem:[%s3549_s8 + $0x60] sm:$0xff]  ;;  %v1344_v25 = vld [vmem:[%s3549_s8 + $0x68] sm:$0xff] }
 0x17c   :  { %1139 = vmatmul.mubr.f32.vlgmr.msra.gmra.mrb[8].mxu0 %v1064_v34 }
 0x17d   :  { %2012 = vmatpush1.bf16.msra.mxu0 %v2011_v30  ;;  %1831 = vmatprep.mubr.msk.f32.mxu0 %vm739_vm11, %v1066_v63  ;;  %v984_v63 = vld [vmem:[%s3548_s5 + $0x138] sm:$0xff]  ;;  %v987_v30 = vld [vmem:[%s3548_s5 + $0x150] sm:$0xff] }
 0x17e   :  { %2014 = vmatprep.subr.bf16.mxu0 %v2013_v31  ;;  %v2045_v54 = vpack.c.bf16 %v984_v63, %v982_v7  ;;  %v990_v31 = vld [vmem:[%s3548_s5 + $0x168] sm:$0xff]  ;;  %v1341_v7 = vld [vmem:[%s3549_s8 + $0x50] sm:$0xff]  ;;  %v1342_v63 = vld [vmem:[%s3549_s8 + $0x58] sm:$0xff] }
 0x17f   :  { %v2053_v34 = vpack.c.bf16 %v992_v32, %v990_v31  ;;  %v2081_v22 = vpack.c.bf16 %v1342_v63, %v1341_v7  ;;  %v1345_v31 = vld [vmem:[%s3549_s8 + $0x70] sm:$0xff]  ;;  %v1346_v32 = vld [vmem:[%s3549_s8 + $0x78] sm:$0xff] }
 0x180   :  { %1145 = vmatmul.mubr.f32.gmra.mrb[10].mxu0 %v1063_v29  ;;  %v985_v29 = vld [vmem:[%s3548_s5 + $0x140] sm:$0xff]  ;;  %v2087_v9 = vpack.c.bf16 %v1346_v32, %v1345_v31 }
 0x181   :  { %2016 = vmatpush1.bf16.msra.mxu0 %v2015_v36  ;;  %1832 = vmatprep.mubr.msk.f32.mxu0 %vm739_vm11, %v783_v11  ;;  %v975_v11 = vld [vmem:[%s3548_s5 + $0xf0] sm:$0xff]  ;;  %v2051_v33 = vpack.c.bf16 %v987_v30, %v985_v29  ;;  %v994_v36 = vld [vmem:[%s3548_s5 + $0x188] sm:$0xff]  ;;  %v2084_v29 = vpack.c.bf16 %v1344_v25, %v1343_v24 }
 0x182   :  { %2018 = vmatprep.subr.bf16.mxu0 %v2017_v37  ;;  %v2039_v17 = vpack.c.bf16 %v975_v11, %v973_v10  ;;  %v996_v37 = vld [vmem:[%s3548_s5 + $0x198] sm:$0xff]  ;;  %v2075_v10 = vpack.c.bf16 %v1338_v4, %v1337_v21 }
 0x183   :  { %v2057_v39 = vpack.c.bf16 %v996_v37, %v994_v36  ;;  %v1347_v36 = vld [vmem:[%s3549_s8 + $0x80] sm:$0xff]  ;;  %v1348_v37 = vld [vmem:[%s3549_s8 + $0x88] sm:$0xff]  ;;  %v1358_v21 = vld [vmem:[%s3549_s8 + $0xd8] sm:$0xff] }
 0x184   :  { %v2090_v40 = vpack.c.bf16 %v1348_v37, %v1347_v36 }
 0x185   :  { %2020 = vmatpush1.bf16.msra.mxu0 %v2019_v43  ;;  %v998_v43 = vld [vmem:[%s3548_s5 + $0x1a8] sm:$0xff] }
 0x186   :  { %2022 = vmatprep.subr.bf16.mxu0 %v2021_v44  ;;  %v1000_v44 = vld [vmem:[%s3548_s5 + $0x1b8] sm:$0xff] }
 0x187   :  { %v2061_v46 = vpack.c.bf16 %v1000_v44, %v998_v43  ;;  %v1349_v43 = vld [vmem:[%s3549_s8 + $0x90] sm:$0xff]  ;;  %v1350_v44 = vld [vmem:[%s3549_s8 + $0x98] sm:$0xff] }
 0x189   :  { %2024 = vmatpush1.bf16.msra.mxu0 %v2023_v3  ;;  %v2063_v3 = vpack.c.bf16 %v999_v49, %v997_v47  ;;  %v2093_v47 = vpack.c.bf16 %v1350_v44, %v1349_v43 }
 0x18a   :  { %2026 = vmatprep.subr.bf16.mxu0 %v2025_v50  ;;  %v1331_v50 = vld [vmem:[%s3549_s8] sm:$0xff] }
 0x18b   :  { %v2066_v53 = vpack.c.bf16 %v1332_v51, %v1331_v50  ;;  %v1352_v50 = vld [vmem:[%s3549_s8 + $0xa8] sm:$0xff] }
 0x18d   :  { %2028 = vmatpush1.bf16.msra.mxu0 %v2027_v58  ;;  %v1464_v58 = vld [vmem:[%s3550_s9 + $0x10] sm:$0xff]  ;;  %2067 = vmatpush1.bf16.msra.mxu1 %v2066_v53  ;;  %v1483_v53 = vld [vmem:[%s3550_s9 + $0xa8] sm:$0xff] }
 0x18e   :  { %2030 = vmatprep.subr.bf16.mxu0 %v2029_v48  ;;  %v1465_v48 = vld [vmem:[%s3550_s9 + $0x18] sm:$0xff]  ;;  %2068 = vmatprep.subr.bf16.mxu1 %v2236_v42 }
 0x18f   :  { %v2153_v59 = vpack.c.bf16 %v1465_v48, %v1464_v58  ;;  %v1484_v58 = vld [vmem:[%s3550_s9 + $0xb0] sm:$0xff]  ;;  %v1485_v48 = vld [vmem:[%s3550_s9 + $0xb8] sm:$0xff] }
 0x191   :  { %2032 = vmatpush1.bf16.msra.mxu0 %v2031_v62  ;;  %v1466_v62 = vld [vmem:[%s3550_s9 + $0x20] sm:$0xff] }
 0x192   :  { %2034 = vmatprep.subr.bf16.mxu0 %v2033_v0  ;;  %v1467_v0 = vld [vmem:[%s3550_s9 + $0x28] sm:$0xff] }
 0x193   :  { %v2156_v2 = vpack.c.bf16 %v1467_v0, %v1466_v62  ;;  %v1486_v62 = vld [vmem:[%s3550_s9 + $0xc0] sm:$0xff]  ;;  %v1487_v0 = vld [vmem:[%s3550_s9 + $0xc8] sm:$0xff] }
 0x195   :  { %2036 = vmatpush1.bf16.msra.mxu0 %v2035_v5  ;;  %v1468_v5 = vld [vmem:[%s3550_s9 + $0x30] sm:$0xff] }
 0x196   :  { %2038 = vmatprep.subr.bf16.mxu0 %v2037_v6  ;;  %v1469_v6 = vld [vmem:[%s3550_s9 + $0x38] sm:$0xff] }
 0x197   :  { %v2159_v11 = vpack.c.bf16 %v1469_v6, %v1468_v5  ;;  %v1488_v5 = vld [vmem:[%s3550_s9 + $0xd0] sm:$0xff]  ;;  %v1489_v6 = vld [vmem:[%s3550_s9 + $0xd8] sm:$0xff] }
 0x199   :  { %2040 = vmatpush1.bf16.msra.mxu0 %v2039_v17  ;;  %v1470_v17 = vld [vmem:[%s3550_s9 + $0x40] sm:$0xff] }
 0x19a   :  { %2042 = vmatprep.subr.bf16.mxu0 %v2041_v18  ;;  %v1471_v18 = vld [vmem:[%s3550_s9 + $0x48] sm:$0xff] }
 0x19b   :  { %v2162_v57 = vpack.c.bf16 %v1471_v18, %v1470_v17 }
 0x19d   :  { %2044 = vmatpush1.bf16.msra.mxu0 %v2043_v14  ;;  %v1472_v14 = vld [vmem:[%s3550_s9 + $0x50] sm:$0xff] }
 0x19e   :  { %2046 = vmatprep.subr.bf16.mxu0 %v2045_v54  ;;  %v1473_v54 = vld [vmem:[%s3550_s9 + $0x58] sm:$0xff] }
 0x19f   :  { %v2165_v23 = vpack.c.bf16 %v1473_v54, %v1472_v14 }
 0x1a1   :  { %2048 = vmatpush1.bf16.msra.mxu0 %v2047_v27  ;;  %v1474_v27 = vld [vmem:[%s3550_s9 + $0x60] sm:$0xff] }
 0x1a2   :  { %2050 = vmatprep.subr.bf16.mxu0 %v2049_v28  ;;  %v1475_v28 = vld [vmem:[%s3550_s9 + $0x68] sm:$0xff] }
 0x1a3   :  { %v2168_v30 = vpack.c.bf16 %v1475_v28, %v1474_v27 }
 0x1a5   :  { %2052 = vmatpush1.bf16.msra.mxu0 %v2051_v33  ;;  %v1476_v33 = vld [vmem:[%s3550_s9 + $0x70] sm:$0xff] }
 0x1a6   :  { %2054 = vmatprep.subr.bf16.mxu0 %v2053_v34  ;;  %v1477_v34 = vld [vmem:[%s3550_s9 + $0x78] sm:$0xff] }
 0x1a7   :  { %v2171_v35 = vpack.c.bf16 %v1477_v34, %v1476_v33 }
 0x1a9   :  { %2056 = vmatpush1.bf16.msra.mxu0 %v2055_v38  ;;  %v1478_v38 = vld [vmem:[%s3550_s9 + $0x80] sm:$0xff] }
 0x1aa   :  { %2058 = vmatprep.subr.bf16.mxu0 %v2057_v39  ;;  %v1479_v39 = vld [vmem:[%s3550_s9 + $0x88] sm:$0xff] }
 0x1ab   :  { %v2174_v41 = vpack.c.bf16 %v1479_v39, %v1478_v38 }
 0x1ad   :  { %2060 = vmatpush1.bf16.msra.mxu0 %v2059_v45  ;;  %v1480_v45 = vld [vmem:[%s3550_s9 + $0x90] sm:$0xff] }
 0x1ae   :  { %2062 = vmatprep.subr.bf16.mxu0 %v2061_v46  ;;  %v1481_v46 = vld [vmem:[%s3550_s9 + $0x98] sm:$0xff] }
 0x1af   :  { %v2177_v49 = vpack.c.bf16 %v1481_v46, %v1480_v45 }
 0x1b1   :  { %2064 = vmatpush1.bf16.msra.mxu0 %v2063_v3  ;;  %v1351_v3 = vld [vmem:[%s3549_s8 + $0xa0] sm:$0xff] }
 0x1b2   :  { %2149 = vmatprep.subr.bf16.mxu0 %v2236_v42  ;;  %v2096_v51 = vpack.c.bf16 %v1352_v50, %v1351_v3 }
 0x1b4   :  { %1216 = vmatmul.mubr.f32.vlgmr.msra.gmra.mrb[8].mxu0 %v2869_v12  ;;  %v1463_v12 = vld [vmem:[%s3550_s9 + $0x8] sm:$0xff] }
 0x1b5   :  { %1833 = vmatprep.mubr.msk.f32.mxu0 %vm739_vm11, %v2874_v20  ;;  %v1333_v20 = vld [vmem:[%s3549_s8 + $0x10] sm:$0xff]  ;;  %v2150_v56 = vpack.c.bf16 %v1463_v12, %v1462_v52  ;;  %v1482_v52 = vld [vmem:[%s3550_s9 + $0xa0] sm:$0xff] }
 0x1b6   :  { %v2180_v12 = vpack.c.bf16 %v1483_v53, %v1482_v52 }
 0x1b7   :  { %2151 = vmatpush1.bf16.msra.mxu0 %v2150_v56 }
 0x1b8   :  { %1222 = vmatmul.mubr.f32.gmra.mrb[10].mxu0 %v2892_v26  ;;  %v1334_v26 = vld [vmem:[%s3549_s8 + $0x18] sm:$0xff]  ;;  %2152 = vmatprep.subr.bf16.mxu0 %v2236_v42 }
 0x1b9   :  { %v2069_v55 = vpack.c.bf16 %v1334_v26, %v1333_v20  ;;  %v1353_v20 = vld [vmem:[%s3549_s8 + $0xb0] sm:$0xff]  ;;  %v1354_v26 = vld [vmem:[%s3549_s8 + $0xb8] sm:$0xff] }
 0x1ba   :  { %v2099_v56 = vpack.c.bf16 %v1354_v26, %v1353_v20 }
 0x1bb   :  { %2070 = vmatpush1.bf16.msra.mxu1 %v2069_v55  ;;  %2154 = vmatpush1.bf16.msra.mxu0 %v2153_v59  ;;  %v2183_v55 = vpack.c.bf16 %v1485_v48, %v1484_v58  ;;  %v1355_v59 = vld [vmem:[%s3549_s8 + $0xc0] sm:$0xff] }
 0x1bc   :  { %2071 = vmatprep.subr.bf16.mxu1 %v2236_v42  ;;  %2155 = vmatprep.subr.bf16.mxu0 %v2236_v42  ;;  %v2102_v61 = vpack.c.bf16 %v1356_v60, %v1355_v59  ;;  %v1490_v48 = vld [vmem:[%s3552_s7] sm:$0xff] }
 0x1bf   :  { %2073 = vmatpush1.bf16.msra.mxu1 %v2072_v1  ;;  %2157 = vmatpush1.bf16.msra.mxu0 %v2156_v2  ;;  %v2186_v1 = vpack.c.bf16 %v1487_v0, %v1486_v62  ;;  %v1357_v2 = vld [vmem:[%s3549_s8 + $0xd0] sm:$0xff]  ;;  %v1493_v62 = vld [vmem:[%s3552_s7 + $0x18] sm:$0xff] }
 0x1c0   :  { %2074 = vmatprep.subr.bf16.mxu1 %v2236_v42  ;;  %2158 = vmatprep.subr.bf16.mxu0 %v2236_v42  ;;  %v2105_v4 = vpack.c.bf16 %v1358_v21, %v1357_v2  ;;  %v1494_v21 = vld [vmem:[%s3552_s7 + $0x20] sm:$0xff] }
 0x1c3   :  { %2076 = vmatpush1.bf16.msra.mxu1 %v2075_v10  ;;  %2160 = vmatpush1.bf16.msra.mxu0 %v2159_v11  ;;  %v2189_v10 = vpack.c.bf16 %v1489_v6, %v1488_v5  ;;  %v790_v11 = vld [vmem:[%s3551_s6] sm:$0x3] }
 0x1c4   :  { %2077 = vmatprep.subr.bf16.mxu1 %v2236_v42  ;;  %2161 = vmatprep.subr.bf16.mxu0 %v2236_v42  ;;  %v851_v15 = vrot.slane %v790_v11, %v2612_v8  ;;  %v855_v16 = vrot.slane %v790_v11, %v2619_v13 }
 0x1c7   :  { %2079 = vmatpush1.bf16.msra.mxu1 %v2078_v19  ;;  %2163 = vmatpush1.bf16.msra.mxu0 %v2162_v57 }
 0x1c8   :  { %2080 = vmatprep.subr.bf16.mxu1 %v2236_v42  ;;  %2164 = vmatprep.subr.bf16.mxu0 %v2236_v42 }
 0x1cb   :  { %2082 = vmatpush1.bf16.msra.mxu1 %v2081_v22  ;;  %2166 = vmatpush1.bf16.msra.mxu0 %v2165_v23 }
 0x1cc   :  { %2083 = vmatprep.subr.bf16.mxu1 %v2236_v42  ;;  %2167 = vmatprep.subr.bf16.mxu0 %v2236_v42 }
 0x1cf   :  { %2085 = vmatpush1.bf16.msra.mxu1 %v2084_v29  ;;  %2169 = vmatpush1.bf16.msra.mxu0 %v2168_v30 }
 0x1d0   :  { %2086 = vmatprep.subr.bf16.mxu1 %v2236_v42  ;;  %2170 = vmatprep.subr.bf16.mxu0 %v2236_v42 }
 0x1d3   :  { %2088 = vmatpush1.bf16.msra.mxu1 %v2087_v9  ;;  %2172 = vmatpush1.bf16.msra.mxu0 %v2171_v35 }
 0x1d4   :  { %2089 = vmatprep.subr.bf16.mxu1 %v2236_v42  ;;  %2173 = vmatprep.subr.bf16.mxu0 %v2236_v42 }
 0x1d7   :  { %2091 = vmatpush1.bf16.msra.mxu1 %v2090_v40  ;;  %2175 = vmatpush1.bf16.msra.mxu0 %v2174_v41 }
 0x1d8   :  { %2092 = vmatprep.subr.bf16.mxu1 %v2236_v42  ;;  %2176 = vmatprep.subr.bf16.mxu0 %v2236_v42 }
 0x1db   :  { %2094 = vmatpush1.bf16.msra.mxu1 %v2093_v47  ;;  %2178 = vmatpush1.bf16.msra.mxu0 %v2177_v49 }
 0x1dc   :  { %2095 = vmatprep.subr.bf16.mxu1 %v2236_v42  ;;  %2179 = vmatprep.subr.bf16.mxu0 %v2236_v42 }
 0x1df   :  { %2097 = vmatpush1.bf16.msra.mxu1 %v2096_v51  ;;  %2181 = vmatpush1.bf16.msra.mxu0 %v2180_v12 }
 0x1e0   :  { %2098 = vmatprep.subr.bf16.mxu1 %v2236_v42  ;;  %2182 = vmatprep.subr.bf16.mxu0 %v2236_v42 }
 0x1e3   :  { %2100 = vmatpush1.bf16.msra.mxu1 %v2099_v56  ;;  %2184 = vmatpush1.bf16.msra.mxu0 %v2183_v55  ;;  %v1491_v55 = vld [vmem:[%s3552_s7 + $0x8] sm:$0xff] }
 0x1e4   :  { %2101 = vmatprep.subr.bf16.mxu1 %v2236_v42  ;;  %2185 = vmatprep.subr.bf16.mxu0 %v2236_v42  ;;  %v2108_v59 = vpack.c.bf16 %v1491_v55, %v1490_v48 }
 0x1e7   :  { %2103 = vmatpush1.bf16.msra.mxu1 %v2102_v61  ;;  %2187 = vmatpush1.bf16.msra.mxu0 %v2186_v1  ;;  %v1492_v61 = vld [vmem:[%s3552_s7 + $0x10] sm:$0xff] }
 0x1e8   :  { %2104 = vmatprep.subr.bf16.mxu1 %v2236_v42  ;;  %2188 = vmatprep.subr.bf16.mxu0 %v2236_v42  ;;  %v2111_v2 = vpack.c.bf16 %v1493_v62, %v1492_v61  ;;  %v3409_v61 = vld [vmem:[%s3553_s10] ss:$0 sm:$0xff] }
 0x1eb   :  { %2106 = vmatpush1.bf16.msra.mxu1 %v2105_v4  ;;  %2190 = vmatpush1.bf16.msra.mxu0 %v2189_v10  ;;  %v1495_v4 = vld [vmem:[%s3552_s7 + $0x28] sm:$0xff] }
 0x1ec   :  { %2107 = vmatprep.subr.bf16.mxu1 %v2236_v42  ;;  %v2114_v10 = vpack.c.bf16 %v1495_v4, %v1494_v21 }
 0x240   :  { %v930_v17 = vpop.f32.mrb[6].mxu1 }
 0x241   :  { %v931_v18 = vadd.f32 %v930_v17, %v851_v15  ;;  %v932_v19 = vpop.f32.mrb[7].mxu1 }
 0x242   :  { %v933_v57 = vadd.f32 %v932_v19, %v855_v16 }
 0x243   :  { %v941_v7 = vmax.f32 %v931_v18, 0.0 }
 0x244   :  { %v942_v63 = vmax.f32 %v933_v57, 0.0 }
 0x245   :  { %1238 = vst [vmem:[#allocation3] sm:$0x3] %v941_v7  ;;  %v1250_v14 = vrot.slane %v941_v7, 6  ;;  %v1262_v54 = vrot.slane %v941_v7, 4  ;;  %v1274_v22 = vrot.slane %v941_v7, 2 }
 0x246   :  { %1239 = vst.msk [vmem:[#allocation3 + $0x8] sm:$0x3] %vm691_vm5, %v942_v63  ;;  %v1251_v23 = vrot.slane %v942_v63, 6  ;;  %v1263_v24 = vrot.slane %v942_v63, 4  ;;  %v1275_v25 = vrot.slane %v942_v63, 2  ;;  %v1498_v63 = vld [vmem:[%s3552_s7 + $0x40] sm:$0xff] }
 0x247   :  { %1254 = vst [vmem:[#allocation3] sm:$0x30] %v1250_v14  ;;  %1266 = vst [vmem:[#allocation3 + $0x10] sm:$0x3] %v1262_v54  ;;  %v1499_v14 = vld [vmem:[%s3552_s7 + $0x48] sm:$0xff] }
 0x248   :  { %1278 = vst [vmem:[#allocation3 + $0x10] sm:$0x30] %v1274_v22  ;;  %1255 = vst.msk [vmem:[#allocation3 + $0x8] sm:$0x30] %vm730_vm7, %v1251_v23  ;;  %v2120_v23 = vpack.c.bf16 %v1499_v14, %v1498_v63 }
 0x249   :  { %1267 = vst.msk [vmem:[#allocation3 + $0x18] sm:$0x3] %vm691_vm5, %v1263_v24  ;;  %v1500_v24 = vld [vmem:[%s3552_s7 + $0x50] sm:$0xff] }
 0x24a   :  { %1279 = vst.msk [vmem:[#allocation3 + $0x18] sm:$0x30] %vm730_vm7, %v1275_v25  ;;  %v1501_v25 = vld [vmem:[%s3552_s7 + $0x58] sm:$0xff] }
 0x24b   :  { %v936_v8 = vpop.f32.mrb[8].mxu1 }
 0x24c   :  { %v937_v13 = vadd.f32 %v936_v8, %v851_v15  ;;  %v938_v27 = vpop.f32.mrb[9].mxu1  ;;  %v2123_v8 = vpack.c.bf16 %v1501_v25, %v1500_v24 }
 0x24d   :  { %v939_v28 = vadd.f32 %v938_v27, %v855_v16  ;;  %v1503_v27 = vld [vmem:[%s3552_s7 + $0x68] sm:$0xff] }
 0x24e   :  { %v943_v29 = vmax.f32 %v937_v13, 0.0  ;;  %v1502_v13 = vld [vmem:[%s3552_s7 + $0x60] sm:$0xff] }
 0x24f   :  { %v944_v30 = vmax.f32 %v939_v28, 0.0  ;;  %v2126_v28 = vpack.c.bf16 %v1503_v27, %v1502_v13 }
 0x250   :  { %1282 = vst [vmem:[#allocation3 + $0x20] sm:$0x3] %v943_v29  ;;  %v1294_v31 = vrot.slane %v943_v29, 6  ;;  %v1306_v32 = vrot.slane %v943_v29, 4  ;;  %v1504_v29 = vld [vmem:[%s3552_s7 + $0x70] sm:$0xff] }
 0x251   :  { %1283 = vst.msk [vmem:[#allocation3 + $0x28] sm:$0x3] %vm691_vm5, %v944_v30  ;;  %v1295_v33 = vrot.slane %v944_v30, 6  ;;  %v1307_v34 = vrot.slane %v944_v30, 4  ;;  %v1505_v30 = vld [vmem:[%s3552_s7 + $0x78] sm:$0xff] }
 0x252   :  { %1298 = vst [vmem:[#allocation3 + $0x20] sm:$0x30] %v1294_v31  ;;  %1310 = vst [vmem:[#allocation3 + $0x30] sm:$0x3] %v1306_v32  ;;  %v2129_v31 = vpack.c.bf16 %v1505_v30, %v1504_v29  ;;  %v1506_v32 = vld [vmem:[%s3552_s7 + $0x80] sm:$0xff] }
 0x253   :  { %1299 = vst.msk [vmem:[#allocation3 + $0x28] sm:$0x30] %vm730_vm7, %v1295_v33  ;;  %v1507_v33 = vld [vmem:[%s3552_s7 + $0x88] sm:$0xff] }
 0x254   :  { %1311 = vst.msk [vmem:[#allocation3 + $0x38] sm:$0x3] %vm691_vm5, %v1307_v34  ;;  %v2132_v34 = vpack.c.bf16 %v1507_v33, %v1506_v32 }
 0x287   :  { %v1217_v9 = vpop.f32.mrb[8].mxu0 }
 0x288   :  { %v1228_v35 = vadd.f32 %v1217_v9, %v851_v15  ;;  %v1219_v36 = vpop.f32.mrb[9].mxu0  ;;  %v1508_v9 = vld [vmem:[%s3552_s7 + $0x90] sm:$0xff] }
 0x289   :  { %v1229_v37 = vadd.f32 %v1219_v36, %v855_v16 }
 0x28a   :  { %v1232_v38 = vmax.f32 %v1228_v35, 0.0  ;;  %v1509_v35 = vld [vmem:[%s3552_s7 + $0x98] sm:$0xff] }
 0x28b   :  { %v1233_v39 = vmax.f32 %v1229_v37, 0.0  ;;  %v1223_v40 = vpop.f32.mrb[10].mxu0  ;;  %v2135_v36 = vpack.c.bf16 %v1509_v35, %v1508_v9  ;;  %v1510_v37 = vld [vmem:[%s3552_s7 + $0xa0] sm:$0xff] }
 0x28c   :  { %v1242_v41 = vrot.slane %v1232_v38, 6  ;;  %v1256_v43 = vrot.slane %v1232_v38, 4  ;;  %v1268_v44 = vrot.slane %v1232_v38, 2  ;;  %1280 = vst [vmem:[#allocation3 + $0x10] sm:$0xc0] %v1232_v38  ;;  %v1230_v45 = vadd.f32 %v1223_v40, %v851_v15  ;;  %v1225_v46 = vpop.f32.mrb[11].mxu0 }
 0x28d   :  { %v1243_v47 = vrot.slane %v1233_v39, 6  ;;  %v1257_v49 = vrot.slane %v1233_v39, 4  ;;  %v1269_v3 = vrot.slane %v1233_v39, 2  ;;  %1281 = vst.msk [vmem:[#allocation3 + $0x18] sm:$0xc0] %vm688_vm6, %v1233_v39  ;;  %v1231_v50 = vadd.f32 %v1225_v46, %v855_v16  ;;  %v1496_v15 = vld [vmem:[%s3552_s7 + $0x30] sm:$0xff] }
 0x28e   :  { %1246 = vst [vmem:[#allocation3] sm:$0xc] %v1242_v41  ;;  %1260 = vst [vmem:[#allocation3] sm:$0xc0] %v1256_v43  ;;  %v1234_v51 = vmax.f32 %v1230_v45, 0.0  ;;  %v1497_v16 = vld [vmem:[%s3552_s7 + $0x38] sm:$0xff] }
 0x28f   :  { %1272 = vst [vmem:[#allocation3 + $0x10] sm:$0xc] %v1268_v44  ;;  %1247 = vst.msk [vmem:[#allocation3 + $0x8] sm:$0xc] %vm711_vm9, %v1243_v47  ;;  %v1235_v52 = vmax.f32 %v1231_v50, 0.0  ;;  %v2117_v7 = vpack.c.bf16 %v1497_v16, %v1496_v15  ;;  %v1511_v38 = vld [vmem:[%s3552_s7 + $0xa8] sm:$0xff] }
 0x290   :  { %1261 = vst.msk [vmem:[#allocation3 + $0x8] sm:$0xc0] %vm688_vm6, %v1257_v49  ;;  %v1286_v53 = vrot.slane %v1234_v51, 6  ;;  %v1300_v12 = vrot.slane %v1234_v51, 4  ;;  %v1312_v20 = vrot.slane %v1234_v51, 2  ;;  %v2138_v39 = vpack.c.bf16 %v1511_v38, %v1510_v37  ;;  %v1512_v40 = vld [vmem:[%s3552_s7 + $0xb0] sm:$0xff] }
 0x291   :  { %1273 = vst.msk [vmem:[#allocation3 + $0x18] sm:$0xc] %vm711_vm9, %v1269_v3  ;;  %v1287_v26 = vrot.slane %v1235_v52, 6  ;;  %v1301_v56 = vrot.slane %v1235_v52, 4  ;;  %v1313_v58 = vrot.slane %v1235_v52, 2  ;;  %v1513_v41 = vld [vmem:[%s3552_s7 + $0xb8] sm:$0xff] }
 0x292   :  { %1290 = vst [vmem:[#allocation3 + $0x20] sm:$0xc] %v1286_v53  ;;  %1304 = vst [vmem:[#allocation3 + $0x20] sm:$0xc0] %v1300_v12  ;;  %v2141_v43 = vpack.c.bf16 %v1513_v41, %v1512_v40  ;;  %v1514_v44 = vld [vmem:[%s3552_s7 + $0xc0] sm:$0xff]  ;;  %v1515_v45 = vld [vmem:[%s3552_s7 + $0xc8] sm:$0xff] }
 0x293   :  { %1316 = vst [vmem:[#allocation3 + $0x30] sm:$0xc] %v1312_v20  ;;  %1291 = vst.msk [vmem:[#allocation3 + $0x28] sm:$0xc] %vm711_vm9, %v1287_v26  ;;  %v2144_v46 = vpack.c.bf16 %v1515_v45, %v1514_v44  ;;  %v1516_v47 = vld [vmem:[%s3552_s7 + $0xd0] sm:$0xff]  ;;  %v1517_v49 = vld [vmem:[%s3552_s7 + $0xd8] sm:$0xff] }
 0x294   :  { %1305 = vst.msk [vmem:[#allocation3 + $0x28] sm:$0xc0] %vm688_vm6, %v1301_v56  ;;  %v2147_v50 = vpack.c.bf16 %v1517_v49, %v1516_v47 }
 0x295   :  { %1317 = vst.msk [vmem:[#allocation3 + $0x38] sm:$0xc] %vm711_vm9, %v1313_v58  ;;  %v1318_v0 = vld [vmem:[#allocation3] sm:$0xff] }
 0x296   :  { %v3294_v5 = vld [vmem:[#allocation3 + $0x10] sm:$0xff]  ;;  %v1326_v3 = vld [vmem:[#allocation3] sm:$0xfc] }
 0x297   :  { %v1319_v60 = vld [vmem:[#allocation3 + $0x8] sm:$0xff]  ;;  %v1525_v51 = vrot.slane %v3294_v5, 2  ;;  %v1524_v52 = vrot.slane %v1326_v3, 2 }
 0x298   :  { %1835 = vmatprep.mubr.msk.f32.mxu1 %vm739_vm11, %v1319_v60  ;;  %1843 = vmatprep.mubr.msk.f32.mxu0 %vm739_vm11, %v1319_v60  ;;  %v3281_v1 = vld [vmem:[#allocation3 + $0x18] sm:$0xff]  ;;  %v1327_v11 = vld [vmem:[#allocation3 + $0x8] sm:$0xfc] }
 0x299   :  { %1442 = vmatmul.mubr.f32.vlgmr.msra.gmra.mrb[10].mxu1 %v1318_v0  ;;  %1700 = vmatmul.mubr.f32.vlgmr.msra.gmra.mrb[12].mxu0 %v1318_v0  ;;  %v3311_v17 = vld [vmem:[#allocation3 + $0x20] sm:$0xff]  ;;  %v1528_v18 = vrot.slane %v3281_v1, 2  ;;  %v1527_v57 = vrot.slane %v1327_v11, 2  ;;  %v1526_v26 = vsel %vm1061_vm12, %v1524_v52, %v1525_v51 }
 0x29a   :  { %2109 = vmatpush1.bf16.msra.mxu1 %v2108_v59  ;;  %1836 = vmatprep.mubr.msk.f32.mxu1 %vm739_vm11, %v3281_v1  ;;  %v1324_v54 = vld [vmem:[#allocation3 + $0x30] sm:$0xf]  ;;  %v1530_v20 = vrot.slane %v3311_v17, 2 }
 0x29b   :  { %1844 = vmatprep.mubr.msk.f32.mxu0 %vm739_vm11, %v3281_v1  ;;  %2110 = vmatprep.subr.bf16.mxu1 %v2236_v42  ;;  %v3298_v6 = vld [vmem:[#allocation3 + $0x28] sm:$0xff]  ;;  %v1529_v22 = vsel %vm1061_vm12, %v1527_v57, %v1528_v18  ;;  %v1328_v48 = vld [vmem:[#allocation3 + $0x30] sm:$0x3f] }
 0x29c   :  { %v1325_v19 = vld [vmem:[#allocation3 + $0x38] sm:$0xf]  ;;  %v1532_v53 = vrot.slane %v3298_v6, 2  ;;  %v1534_v55 = vrot.slane %v1328_v48, 2 }
 0x29d   :  { %1447 = vmatmul.mubr.f32.gmra.mrb[12].mxu1 %v3294_v5  ;;  %1705 = vmatmul.mubr.f32.gmra.mrb[14].mxu0 %v3294_v5  ;;  %v1329_v12 = vld [vmem:[#allocation3 + $0x38] sm:$0x3f] }
 0x29e   :  { %2112 = vmatpush1.bf16.msra.mxu1 %v2111_v2  ;;  %1837 = vmatprep.mubr.msk.f32.mxu1 %vm739_vm11, %v3298_v6  ;;  %v1533_v56 = vsel %vm1061_vm12, %v1528_v18, %v1532_v53  ;;  %v1536_v58 = vrot.slane %v1329_v12, 2  ;;  %v1535_v60 = vsel %vm1061_vm12, %v1530_v20, %v1534_v55 }
 0x29f   :  { %1845 = vmatprep.mubr.msk.f32.mxu0 %vm739_vm11, %v3298_v6  ;;  %2113 = vmatprep.subr.bf16.mxu1 %v2236_v42 }
 0x2a0   :  { %v1537_v59 = vsel %vm1061_vm12, %v1532_v53, %v1536_v58 }
 0x2a1   :  { %1452 = vmatmul.mubr.f32.gmra.mrb[14].mxu1 %v3311_v17  ;;  %1710 = vmatmul.mubr.f32.gmra.mrb[16].mxu0 %v3311_v17 }
 0x2a2   :  { %2115 = vmatpush1.bf16.msra.mxu1 %v2114_v10  ;;  %1838 = vmatprep.mubr.msk.f32.mxu1 %vm739_vm11, %v1325_v19 }
 0x2a3   :  { %1846 = vmatprep.mubr.msk.f32.mxu0 %vm739_vm11, %v1325_v19  ;;  %2116 = vmatprep.subr.bf16.mxu1 %v2236_v42 }
 0x2a5   :  { %1457 = vmatmul.mubr.f32.gmra.mrb[16].mxu1 %v1324_v54  ;;  %1715 = vmatmul.mubr.f32.gmra.mrb[18].mxu0 %v1324_v54 }
 0x2a6   :  { %2118 = vmatpush1.bf16.msra.mxu1 %v2117_v7  ;;  %1839 = vmatprep.mubr.msk.f32.mxu1 %vm739_vm11, %v1529_v22 }
 0x2a7   :  { %2119 = vmatprep.subr.bf16.mxu1 %v2236_v42 }
 0x2aa   :  { %2121 = vmatpush1.bf16.msra.mxu1 %v2120_v23 }
 0x2ab   :  { %2122 = vmatprep.subr.bf16.mxu1 %v2236_v42 }
 0x2ae   :  { %2124 = vmatpush1.bf16.msra.mxu1 %v2123_v8 }
 0x2af   :  { %2125 = vmatprep.subr.bf16.mxu1 %v2236_v42 }
 0x2b2   :  { %2127 = vmatpush1.bf16.msra.mxu1 %v2126_v28 }
 0x2b3   :  { %2128 = vmatprep.subr.bf16.mxu1 %v2236_v42 }
 0x2b6   :  { %2130 = vmatpush1.bf16.msra.mxu1 %v2129_v31 }
 0x2b7   :  { %2131 = vmatprep.subr.bf16.mxu1 %v2236_v42 }
 0x2ba   :  { %2133 = vmatpush1.bf16.msra.mxu1 %v2132_v34 }
 0x2bb   :  { %2134 = vmatprep.subr.bf16.mxu1 %v2236_v42 }
 0x2be   :  { %2136 = vmatpush1.bf16.msra.mxu1 %v2135_v36 }
 0x2bf   :  { %2137 = vmatprep.subr.bf16.mxu1 %v2236_v42 }
 0x2c2   :  { %2139 = vmatpush1.bf16.msra.mxu1 %v2138_v39 }
 0x2c3   :  { %2140 = vmatprep.subr.bf16.mxu1 %v2236_v42 }
 0x2c6   :  { %2142 = vmatpush1.bf16.msra.mxu1 %v2141_v43 }
 0x2c7   :  { %2143 = vmatprep.subr.bf16.mxu1 %v2236_v42 }
 0x2ca   :  { %2145 = vmatpush1.bf16.msra.mxu1 %v2144_v46 }
 0x2cb   :  { %2146 = vmatprep.subr.bf16.mxu1 %v2236_v42  ;;  %v1531_v42 = vsel %vm1061_vm12, %v1525_v51, %v1530_v20 }
 0x2ce   :  { %2148 = vmatpush1.bf16.msra.mxu1 %v2147_v50 }
 0x2d1   :  { %1615 = vmatmul.mubr.f32.vlgmr.msra.gmra.mrb[18].mxu1 %v1526_v26 }
 0x2d2   :  { %1840 = vmatprep.mubr.msk.f32.mxu1 %vm739_vm11, %v1533_v56 }
 0x2d5   :  { %1620 = vmatmul.mubr.f32.gmra.mrb[20].mxu1 %v1531_v42 }
 0x2d6   :  { %1841 = vmatprep.mubr.msk.f32.mxu1 %vm739_vm11, %v1537_v59 }
 0x2d9   :  { %1625 = vmatmul.mubr.f32.gmra.mrb[22].mxu1 %v1535_v60 }
 0x2da   :  { %1842 = vmatprep.mubr.msk.f32.mxu1 %vm739_vm11, %v1536_v58 }
 0x2dd   :  { %1630 = vmatmul.mubr.f32.gmra.mrb[24].mxu1 %v1534_v55 }
 0x36c   :  { %v1443_v62 = vpop.f32.mrb[10].mxu1  ;;  %v3411_v0 = vpop.f32.mrb[12].mxu0 }
 0x36d   :  { %v1444_v1 = vadd.f32 %v3409_v61, %v1443_v62  ;;  %v1445_v2 = vpop.f32.mrb[11].mxu1  ;;  %v1703_v21 = vpop.f32.mrb[13].mxu0 }
 0x36f   :  { %v1724_v4 = vsub.f32 0.0, %v1444_v1 }
 0x370   :  { %v1448_v5 = vpop.f32.mrb[12].mxu1  ;;  %v3414_v6 = vpop.f32.mrb[14].mxu0 }
 0x371   :  { %v1728_v10 = vmul.f32 1.442695, %v1724_v4  ;;  %v1449_v11 = vadd.f32 %v3409_v61, %v1448_v5  ;;  %v1450_v15 = vpop.f32.mrb[13].mxu1  ;;  %v1708_v16 = vpop.f32.mrb[15].mxu0 }
 0x373   :  { %2202 = vpow2.f32 %v1728_v10  ;;  %v1725_v17 = vsub.f32 0.0, %v1449_v11 }
 0x374   :  { %v1453_v18 = vpop.f32.mrb[14].mxu1  ;;  %v3417_v19 = vpop.f32.mrb[16].mxu0 }
 0x375   :  { %v1730_v57 = vmul.f32 1.442695, %v1725_v17  ;;  %v1454_v7 = vadd.f32 %v3409_v61, %v1453_v18  ;;  %v1455_v63 = vpop.f32.mrb[15].mxu1  ;;  %v1713_v14 = vpop.f32.mrb[17].mxu0 }
 0x377   :  { %2204 = vpow2.f32 %v1730_v57  ;;  %v1726_v54 = vsub.f32 0.0, %v1454_v7 }
 0x378   :  { %v1458_v22 = vpop.f32.mrb[16].mxu1  ;;  %v3420_v23 = vpop.f32.mrb[18].mxu0 }
 0x379   :  { %v1732_v24 = vmul.f32 1.442695, %v1726_v54  ;;  %v1459_v25 = vadd.f32 %v3409_v61, %v1458_v22  ;;  %v1460_v8 = vpop.f32.mrb[17].mxu1  ;;  %v1718_v13 = vpop.f32.mrb[19].mxu0 }
 0x37b   :  { %2206 = vpow2.f32 %v1732_v24  ;;  %v1727_v27 = vsub.f32 0.0, %v1459_v25 }
 0x37d   :  { %v2203_v28 = vpop.eup %2202  ;;  %v1734_v29 = vmul.f32 1.442695, %v1727_v27 }
 0x37e   :  { %v1736_v30 = vadd.f32 1.0, %v2203_v28 }
 0x37f   :  { %2208 = vpow2.f32 %v1734_v29 }
 0x380   :  { %2210 = vrcp.f32 %v1736_v30 }
 0x381   :  { %v2205_v31 = vpop.eup %2204 }
 0x382   :  { %v1737_v32 = vadd.f32 1.0, %v2205_v31 }
 0x384   :  { %2212 = vrcp.f32 %v1737_v32 }
 0x385   :  { %v2207_v33 = vpop.eup %2206 }
 0x386   :  { %v1738_v34 = vadd.f32 1.0, %v2207_v33 }
 0x388   :  { %2214 = vrcp.f32 %v1738_v34 }
 0x389   :  { %v2209_v9 = vpop.eup %2208 }
 0x38a   :  { %v2211_v35 = vpop.eup %2210  ;;  %v1739_v36 = vadd.f32 1.0, %v2209_v9 }
 0x38b   :  { %1779 = vst.msk [vmem:[%s3554_s11 + $0x4] sm:$0x30] %vm1778_vm13, %v2211_v35 }
 0x38c   :  { %1782 = vst.msk [vmem:[%s3554_s11 + $0x6] sm:$0xc0] %vm1781_vm14, %v2211_v35  ;;  %2216 = vrcp.f32 %v1739_v36 }
 0x38d   :  { %1773 = vst.msk [vmem:[%s3554_s11] sm:$0x3] %vm1772_vm15, %v2211_v35 }
 0x38e   :  { %1776 = vst.msk [vmem:[%s3554_s11 + $0x2] sm:$0xc] %vm1775_vm0, %v2211_v35  ;;  %v2213_v37 = vpop.eup %2212 }
 0x38f   :  { %1788 = vst.msk [vmem:[%s3554_s11 + $0x14] sm:$0x30] %vm1778_vm13, %v2213_v37 }
 0x390   :  { %1790 = vst.msk [vmem:[%s3554_s11 + $0x16] sm:$0xc0] %vm1781_vm14, %v2213_v37 }
 0x391   :  { %1784 = vst.msk [vmem:[%s3554_s11 + $0x10] sm:$0x3] %vm1772_vm15, %v2213_v37 }
 0x392   :  { %1786 = vst.msk [vmem:[%s3554_s11 + $0x12] sm:$0xc] %vm1775_vm0, %v2213_v37  ;;  %v2215_v38 = vpop.eup %2214 }
 0x393   :  { %1796 = vst.msk [vmem:[%s3554_s11 + $0x24] sm:$0x30] %vm1778_vm13, %v2215_v38 }
 0x394   :  { %1798 = vst.msk [vmem:[%s3554_s11 + $0x26] sm:$0xc0] %vm1781_vm14, %v2215_v38 }
 0x395   :  { %1792 = vst.msk [vmem:[%s3554_s11 + $0x20] sm:$0x3] %vm1772_vm15, %v2215_v38 }
 0x396   :  { %1794 = vst.msk [vmem:[%s3554_s11 + $0x22] sm:$0xc] %vm1775_vm0, %v2215_v38  ;;  %v2217_v39 = vpop.eup %2216 }
 0x397   :  { %1800 = vst.msk [vmem:[%s3554_s11 + $0x30] sm:$0x3] %vm1772_vm15, %v2217_v39 }
 0x398   :  { %1802 = vst.msk [vmem:[%s3554_s11 + $0x32] sm:$0xc] %vm1775_vm0, %v2217_v39 }
 0x3a4   :  { %v1616_v40 = vpop.f32.mrb[18].mxu1 }
 0x3a5   :  { %v1702_v41 = vadd.f32 %v3411_v0, %v1616_v40  ;;  %v1618_v43 = vpop.f32.mrb[19].mxu1 }
 0x3a7   :  { %v1720_v44 = vadd.f32 %v3409_v61, %v1702_v41 }
 0x3a8   :  { %v1621_v45 = vpop.f32.mrb[20].mxu1 }
 0x3a9   :  { %v1748_v46 = vsub.f32 0.0, %v1720_v44  ;;  %v1707_v47 = vadd.f32 %v3414_v6, %v1621_v45  ;;  %v1623_v49 = vpop.f32.mrb[21].mxu1 }
 0x3ab   :  { %v1752_v3 = vmul.f32 1.442695, %v1748_v46  ;;  %v1721_v50 = vadd.f32 %v3409_v61, %v1707_v47 }
 0x3ac   :  { %v1626_v51 = vpop.f32.mrb[22].mxu1 }
 0x3ad   :  { %2218 = vpow2.f32 %v1752_v3  ;;  %v1749_v52 = vsub.f32 0.0, %v1721_v50  ;;  %v1712_v53 = vadd.f32 %v3417_v19, %v1626_v51  ;;  %v1628_v12 = vpop.f32.mrb[23].mxu1 }
 0x3af   :  { %v1754_v20 = vmul.f32 1.442695, %v1749_v52  ;;  %v1722_v26 = vadd.f32 %v3409_v61, %v1712_v53 }
 0x3b0   :  { %v1631_v56 = vpop.f32.mrb[24].mxu1 }
 0x3b1   :  { %2220 = vpow2.f32 %v1754_v20  ;;  %v1750_v58 = vsub.f32 0.0, %v1722_v26  ;;  %v1717_v48 = vadd.f32 %v3420_v23, %v1631_v56  ;;  %v1633_v42 = vpop.f32.mrb[25].mxu1 }
 0x3b3   :  { %v1756_v55 = vmul.f32 1.442695, %v1750_v58  ;;  %v1723_v59 = vadd.f32 %v3409_v61, %v1717_v48 }
 0x3b5   :  { %2222 = vpow2.f32 %v1756_v55  ;;  %v1751_v60 = vsub.f32 0.0, %v1723_v59 }
 0x3b7   :  { %v2219_v62 = vpop.eup %2218  ;;  %v1758_v0 = vmul.f32 1.442695, %v1751_v60 }
 0x3b8   :  { %v1760_v1 = vadd.f32 1.0, %v2219_v62 }
 0x3b9   :  { %2224 = vpow2.f32 %v1758_v0 }
 0x3ba   :  { %2226 = vrcp.f32 %v1760_v1 }
 0x3bb   :  { %v2221_v2 = vpop.eup %2220 }
 0x3bc   :  { %v1761_v21 = vadd.f32 1.0, %v2221_v2 }
 0x3be   :  { %2228 = vrcp.f32 %v1761_v21 }
 0x3bf   :  { %v2223_v4 = vpop.eup %2222 }
 0x3c0   :  { %v1762_v5 = vadd.f32 1.0, %v2223_v4 }
 0x3c2   :  { %2230 = vrcp.f32 %v1762_v5 }
 0x3c3   :  { %v2225_v6 = vpop.eup %2224 }
 0x3c4   :  { %v2227_v10 = vpop.eup %2226  ;;  %v1763_v11 = vadd.f32 1.0, %v2225_v6 }
 0x3c5   :  { %1774 = vst.msk [vmem:[%s3554_s11 + $0x2] sm:$0x3] %vm1772_vm15, %v2227_v10 }
 0x3c6   :  { %1777 = vst.msk [vmem:[%s3554_s11 + $0x4] sm:$0xc] %vm1775_vm0, %v2227_v10  ;;  %2232 = vrcp.f32 %v1763_v11 }
 0x3c7   :  { %1780 = vst.msk [vmem:[%s3554_s11 + $0x6] sm:$0x30] %vm1778_vm13, %v2227_v10 }
 0x3c8   :  { %1783 = vst.msk [vmem:[%s3554_s11 + $0x8] sm:$0xc0] %vm1781_vm14, %v2227_v10  ;;  %v2229_v61 = vpop.eup %2228 }
 0x3c9   :  { %1785 = vst.msk [vmem:[%s3554_s11 + $0x12] sm:$0x3] %vm1772_vm15, %v2229_v61 }
 0x3ca   :  { %1787 = vst.msk [vmem:[%s3554_s11 + $0x14] sm:$0xc] %vm1775_vm0, %v2229_v61 }
 0x3cb   :  { %1789 = vst.msk [vmem:[%s3554_s11 + $0x16] sm:$0x30] %vm1778_vm13, %v2229_v61 }
 0x3cc   :  { %1791 = vst.msk [vmem:[%s3554_s11 + $0x18] sm:$0xc0] %vm1781_vm14, %v2229_v61  ;;  %v2231_v15 = vpop.eup %2230 }
 0x3cd   :  { %1793 = vst.msk [vmem:[%s3554_s11 + $0x22] sm:$0x3] %vm1772_vm15, %v2231_v15 }
 0x3ce   :  { %1795 = vst.msk [vmem:[%s3554_s11 + $0x24] sm:$0xc] %vm1775_vm0, %v2231_v15 }
 0x3cf   :  { %1797 = vst.msk [vmem:[%s3554_s11 + $0x26] sm:$0x30] %vm1778_vm13, %v2231_v15 }
 0x3d0   :  { %1799 = vst.msk [vmem:[%s3554_s11 + $0x28] sm:$0xc0] %vm1781_vm14, %v2231_v15  ;;  %v2233_v16 = vpop.eup %2232 }
 0x3d1   :  { %1801 = vst.msk [vmem:[%s3554_s11 + $0x32] sm:$0x3] %vm1772_vm15, %v2233_v16 }
 0x3d2   :  { %1803 = vst.msk [vmem:[%s3554_s11 + $0x34] sm:$0xc] %vm1775_vm0, %v2233_v16 }

</bundles_post_ra>
